<compile_context>
chip_gen: v7x
topology: tpu7x:2x2x1
jax: 0.10.0
libtpu: 0.0.40
codegen_flags: <defaults>
</compile_context>

<pallas_src>
import functools

import numpy as np
import jax
import jax.numpy as jnp
from jax.experimental import pallas as pl
from jax.experimental.pallas import tpu as pltpu

SPATIAL_K = 7           # CBAM spatial-attention conv kernel
PAD = SPATIAL_K // 2


def _adaptive_attn_kernel(W, x_ref, y_ref, kt_ref, kmean_ref, wmask_ref,
                          w1_ref, w2_ref, out_ref):
    NB, C, HW = x_ref.shape                         # samples/step, channels, H*W

    # ---- bilinear upsample of y: ONE MXU matmul over all NB*C rows ---------
    y2 = y_ref[...]                                                   # (NB*C, hw)
    y_up = jnp.dot(y2, kt_ref[...],
                   preferred_element_type=jnp.float32)                # (NB*C, HW)

    # ---- channel-attention pooled stats (batched over samples) -------------
    mx_all = jnp.max(y_up, axis=1, keepdims=True)                     # (NB*C, 1)
    # mean(upsample(y)) == kmean-weighted mean of coarse y: no HW reduction.
    avg_all = jnp.sum(y2.astype(jnp.float32) * kmean_ref[...],
                      axis=1, keepdims=True)                          # (NB*C, 1)

    # Pack stats as (C, 2*NB) = [avg_0..avg_{NB-1} | max_0..max_{NB-1}]
    # (loop-invariant iota built once, outside the static per-sample loop).
    lanes = jax.lax.broadcasted_iota(jnp.int32, (C, 2 * NB), 1)
    stats = jnp.zeros((C, 2 * NB), jnp.float32)
    for b in range(NB):                                               # static
        stats = jnp.where(lanes == b, avg_all[b * C:(b + 1) * C], stats)
        stats = jnp.where(lanes == NB + b, mx_all[b * C:(b + 1) * C], stats)

    # ---- shared channel MLP: exactly two small matmuls per grid step -------
    hid = jnp.maximum(
        jnp.dot(w1_ref[...], stats, preferred_element_type=jnp.float32), 0.0)  # (Cr, 2*NB)
    o = jnp.dot(w2_ref[...], hid, preferred_element_type=jnp.float32)          # (C, 2*NB)
    ca = jax.nn.sigmoid(o[:, :NB] + o[:, NB:])                                  # (C, NB)

    # ---- gate x and build the stacked spatial planes ------------------------
    rows = jax.lax.broadcasted_iota(jnp.int32, (2 * NB, HW), 0)       # hoisted
    planes = jnp.zeros((2 * NB, HW), jnp.float32)
    g_list = []
    for b in range(NB):                                               # static
        g_b = x_ref[b].astype(jnp.float32) * ca[:, b:b + 1]           # (C, HW)
        g_list.append(g_b)
        planes = jnp.where(rows == b,
                           jnp.mean(g_b, axis=0, keepdims=True), planes)
        planes = jnp.where(rows == NB + b,
                           jnp.max(g_b, axis=0, keepdims=True), planes)

    # ---- 7x7 spatial attention: one roll + mul + add per tap ---------------
    # (weights and boundary masks pre-folded into wmask; two accumulators for ILP)
    acc0 = jnp.zeros((2 * NB, HW), jnp.float32)
    acc1 = jnp.zeros((2 * NB, HW), jnp.float32)
    t = 0
    for dy in range(-PAD, PAD + 1):
        for dx in range(-PAD, PAD + 1):
            # rolled[p] == planes[(p + dy*W + dx) % HW]; wrap-around killed by mask
            shift = (-(dy * W + dx)) % HW
            rolled = planes if shift == 0 else pltpu.roll(planes, shift, axis=1)
            contrib = wmask_ref[t] * rolled
            if t & 1:
                acc1 = acc1 + contrib
            else:
                acc0 = acc0 + contrib
            t += 1
    acc = acc0 + acc1                                                 # (2*NB, HW)
    sa = jax.nn.sigmoid(acc[:NB] + acc[NB:])                          # (NB, HW)

    # ---- lane-dense output store (HW = multiple of 128 lanes) --------------
    for b in range(NB):
        out_ref[b] = (g_list[b] * sa[b:b + 1, :]).astype(out_ref.dtype)


def _bilinear_matrix(out_size: int, in_size: int) -> np.ndarray:
    """Row-interp matrix matching F.interpolate(mode='bilinear', align_corners=False)."""
    scale = in_size / out_size
    dst = np.arange(out_size, dtype=np.float64)
    src = (dst + 0.5) * scale - 0.5
    src = np.maximum(src, 0.0)                      # PyTorch clamps negative source idx
    i0 = np.minimum(np.floor(src).astype(np.int64), in_size - 1)
    i1 = np.minimum(i0 + 1, in_size - 1)
    lam = src - i0
    mat = np.zeros((out_size, in_size), dtype=np.float32)
    mat[np.arange(out_size), i0] += (1.0 - lam)
    mat[np.arange(out_size), i1] += lam
    return mat


def _weighted_boundary_masks(w_sp: np.ndarray, H: int, W: int, NB: int) -> np.ndarray:
    """(49, 2*NB, HW) slab: per-tap conv weights * zero-padding boundary mask.

    Rows 0..NB-1 carry the mean-channel weight, rows NB..2*NB-1 the max-channel
    weight, matching the stacked-plane layout used inside the kernel.
    """
    K = SPATIAL_K
    HW = H * W
    w = np.asarray(w_sp, np.float32).reshape(2, K, K)   # [mean-weights, max-weights]
    p = np.arange(HW)
    row, col = p // W, p % W
    out = np.zeros((K * K, 2 * NB, HW), np.float32)
    t = 0
    for dy in range(-PAD, PAD + 1):
        for dx in range(-PAD, PAD + 1):
            ok = ((row + dy >= 0) & (row + dy < H) &
                  (col + dx >= 0) & (col + dx < W)).astype(np.float32)
            out[t, :NB, :] = w[0, dy + PAD, dx + PAD] * ok
            out[t, NB:, :] = w[1, dy + PAD, dx + PAD] * ok
            t += 1
    return out


def adaptive_attn(x, y, w1t, w2t, w_sp, *, samples_per_step=None,
                  matmul_dtype=jnp.bfloat16):
    """Fused Adaptive_attn forward.

    samples_per_step: None -> whole batch per grid step (best on 1-TC v5e/v6e);
                      use N//2 (or 1) on v7x so both TensorCores get grid work.
    matmul_dtype:     bf16 feeds the MXU its native format (all generations);
                      f32 keeps the exact-precision path.
    """
    N, C, H, W = x.shape
    _, Cy, h_in, w_in = y.shape
    assert Cy == C
    HW, hw = H * W, h_in * w_in
    NB = N if samples_per_step is None else samples_per_step
    assert N % NB == 0, "samples_per_step must divide the batch"

    # ---- host-side precomputation (tiny operators + layout plumbing) ----
    ah = _bilinear_matrix(H, h_in)                          # (H, h)
    aw = _bilinear_matrix(W, w_in)                          # (W, w)
    kmat = np.kron(ah, aw)                                  # (H*W, h*w) bilinear operator
    kt = jnp.asarray(kmat.T, dtype=matmul_dtype)            # (h*w, H*W)
    kmean = jnp.asarray(kmat.mean(axis=0, keepdims=True),
                        dtype=jnp.float32)                  # (1, h*w) mean∘upsample weights
    wmask = jnp.asarray(_weighted_boundary_masks(np.asarray(w_sp), H, W, NB))

    x3 = x.reshape(N, C, HW)                                # lane-dense presentation
    y2 = y.reshape(N * C, hw).astype(matmul_dtype)          # batched upsample operand
    w1f = jnp.asarray(w1t, jnp.float32)                     # (Cr, C)
    w2f = jnp.asarray(w2t, jnp.float32)                     # (C, Cr)

    out = pl.pallas_call(
        functools.partial(_adaptive_attn_kernel, W),
        out_shape=jax.ShapeDtypeStruct((N, C, HW), x.dtype),
        grid=(N // NB,),
        in_specs=[
            pl.BlockSpec((NB, C, HW), lambda n: (n, 0, 0)),          # x
            pl.BlockSpec((NB * C, hw), lambda n: (n, 0)),            # y (coarse, flat)
            pl.BlockSpec((hw, HW), lambda n: (0, 0)),                # kron(AH, AW)^T
            pl.BlockSpec((1, hw), lambda n: (0, 0)),                 # mean weights
            pl.BlockSpec(tuple(wmask.shape), lambda n: (0, 0, 0)),   # weighted masks
            pl.BlockSpec(tuple(w1f.shape), lambda n: (0, 0)),        # MLP w1
            pl.BlockSpec(tuple(w2f.shape), lambda n: (0, 0)),        # MLP w2
        ],
        out_specs=pl.BlockSpec((NB, C, HW), lambda n: (n, 0, 0)),
        compiler_params=pltpu.CompilerParams(
            dimension_semantics=("parallel",)),   # batch shards across v7x's 2 TCs
    )(x3, y2, kt, kmean, wmask, w1f, w2f)
    return out.reshape(N, C, H, W)


def adaptive_attn_reference(x, y, w1t, w2t, w_sp):
    """Pure-JAX reference (HIGHEST precision) with identical semantics."""
    N, C, H, W = x.shape
    _, _, h_in, w_in = y.shape
    hp = jax.lax.Precision.HIGHEST
    ah = jnp.asarray(_bilinear_matrix(H, h_in))
    aw = jnp.asarray(_bilinear_matrix(W, w_in))
    y_up = jnp.einsum('Hh,nchw,Ww->ncHW', ah, y, aw, precision=hp)
    avg = y_up.mean(axis=(2, 3))
    mx = y_up.max(axis=(2, 3))

    def mlp(v):
        h = jnp.maximum(jnp.dot(v, w1t.T, precision=hp), 0.0)
        return jnp.dot(h, w2t.T, precision=hp)

    ca = jax.nn.sigmoid(mlp(avg) + mlp(mx))                     # (N, C)
    g = x * ca[:, :, None, None]
    sp_in = jnp.concatenate([g.mean(axis=1, keepdims=True),
                             g.max(axis=1, keepdims=True)], axis=1)
    w = w_sp.reshape(1, 2, SPATIAL_K, SPATIAL_K)
    logits = jax.lax.conv_general_dilated(
        sp_in, w, (1, 1), ((PAD, PAD), (PAD, PAD)),
        dimension_numbers=('NCHW', 'OIHW', 'NCHW'), precision=hp)
    return g * jax.nn.sigmoid(logits)


if __name__ == "__main__":
    key = jax.random.PRNGKey(0)
    kx, ky, k1, k2, k3 = jax.random.split(key, 5)

    N, C = 2, 8
    H, W = 16, 16          # x spatial size (target of the upsample)
    h_in, w_in = 8, 8      # y spatial size (coarser level)
    reduction = 4
    Cr = C // reduction

    x = jax.random.normal(kx, (N, C, H, W), jnp.float32)
    y = jax.random.normal(ky, (N, C, h_in, w_in), jnp.float32)
    # Deterministic synthetic parameters (bias-free CBAM convs).
    w1t = 0.25 * jax.random.normal(k1, (Cr, C), jnp.float32)    # Conv2d(C, C//r, 1, bias=False)
    w2t = 0.25 * jax.random.normal(k2, (C, Cr), jnp.float32)    # Conv2d(C//r, C, 1, bias=False)
    w_sp = 0.1 * jax.random.normal(k3, (2, SPATIAL_K, SPATIAL_K), jnp.float32)  # Conv2d(2,1,7,pad=3)

    ref = adaptive_attn_reference(x, y, w1t, w2t, w_sp)

    # f32 MXU path, whole batch per grid step (1-TC v5e/v6e sweet spot);
    # 10x tighter tolerance than v1 per the review.
    out_f32 = jax.block_until_ready(
        adaptive_attn(x, y, w1t, w2t, w_sp,
                      samples_per_step=N, matmul_dtype=jnp.float32))
    np.testing.assert_allclose(np.asarray(out_f32), np.asarray(ref),
                               rtol=2e-3, atol=2e-3)

    # bf16 MXU path, 1 sample/step so the ("parallel",) grid covers v7x's 2 TCs.
    out_bf16 = jax.block_until_ready(
        adaptive_attn(x, y, w1t, w2t, w_sp,
                      samples_per_step=1, matmul_dtype=jnp.bfloat16))
    np.testing.assert_allclose(np.asarray(out_bf16), np.asarray(ref),
                               rtol=2e-2, atol=2e-2)

    print("KERNEL_OK")
</pallas_src>

<mosaic_0001>
module attributes {stable_mosaic.version = 11 : i64} {
  func.func @_adaptive_attn_kernel(%arg0: i32, %arg1: memref<2x8x256xf32, #tpu.memory_space<vmem>>, %arg2: memref<16x64xf32, #tpu.memory_space<vmem>>, %arg3: memref<64x256xf32, #tpu.memory_space<vmem>>, %arg4: memref<1x64xf32, #tpu.memory_space<vmem>>, %arg5: memref<49x4x256xf32, #tpu.memory_space<vmem>>, %arg6: memref<2x8xf32, #tpu.memory_space<vmem>>, %arg7: memref<8x2xf32, #tpu.memory_space<vmem>>, %arg8: memref<2x8x256xf32, #tpu.memory_space<vmem>>) attributes {dimension_semantics = [#tpu.dimension_semantics<parallel>], iteration_bounds = array<i64: 1>, scalar_prefetch = 0 : i64, scratch_operands = 0 : i64, tpu.core_type = #tpu.core_type<tc>, window_params = [{transform_indices = @transform_0, window_bounds = array<i64: 2, 8, 256>}, {transform_indices = @transform_1, window_bounds = array<i64: 16, 64>}, {pipeline_mode = #tpu.pipeline_mode<synchronous>, transform_indices = @transform_2, window_bounds = array<i64: 64, 256>}, {pipeline_mode = #tpu.pipeline_mode<synchronous>, transform_indices = @transform_3, window_bounds = array<i64: 1, 64>}, {pipeline_mode = #tpu.pipeline_mode<synchronous>, transform_indices = @transform_4, window_bounds = array<i64: 49, 4, 256>}, {pipeline_mode = #tpu.pipeline_mode<synchronous>, transform_indices = @transform_5, window_bounds = array<i64: 2, 8>}, {pipeline_mode = #tpu.pipeline_mode<synchronous>, transform_indices = @transform_6, window_bounds = array<i64: 8, 2>}, {transform_indices = @transform_7, window_bounds = array<i64: 2, 8, 256>}]} {
    %c0 = arith.constant 0 : index
    %c0_0 = arith.constant 0 : index
    %0 = vector.load %arg2[%c0, %c0_0] : memref<16x64xf32, #tpu.memory_space<vmem>>, vector<16x64xf32>
    %c0_1 = arith.constant 0 : index
    %c0_2 = arith.constant 0 : index
    %1 = vector.load %arg3[%c0_1, %c0_2] : memref<64x256xf32, #tpu.memory_space<vmem>>, vector<64x256xf32>
    %cst = arith.constant dense<0.000000e+00> : vector<16x256xf32>
    %2 = tpu.matmul %0, %1, %cst {dimension_numbers = #tpu.dot_dimension_numbers<[1], [0], [0], [1], [0, 0, 1, 1], [], []>} : vector<16x64xf32>, vector<64x256xf32>, vector<16x256xf32> -> vector<16x256xf32>
    %cst_3 = arith.constant dense<0xFF800000> : vector<16xf32>
    %3 = vector.multi_reduction <maximumf>, %2, %cst_3 [1] : vector<16x256xf32> to vector<16xf32>
    %4 = vector.shape_cast %3 : vector<16xf32> to vector<16x1xf32>
    %c0_4 = arith.constant 0 : index
    %c0_5 = arith.constant 0 : index
    %5 = vector.load %arg4[%c0_4, %c0_5] : memref<1x64xf32, #tpu.memory_space<vmem>>, vector<1x64xf32>
    %6 = vector.broadcast %5 : vector<1x64xf32> to vector<16x64xf32>
    %7 = arith.mulf %0, %6 : vector<16x64xf32>
    %cst_6 = arith.constant dense<0.000000e+00> : vector<16xf32>
    %8 = vector.multi_reduction <add>, %7, %cst_6 [1] : vector<16x64xf32> to vector<16xf32>
    %9 = vector.shape_cast %8 : vector<16xf32> to vector<16x1xf32>
    %10 = tpu.iota {dimensions = array<i32: 1>} : vector<8x4xi32>
    %cst_7 = arith.constant 0.000000e+00 : f32
    %11 = vector.broadcast %cst_7 : f32 to vector<8x4xf32>
    %c0_i32 = arith.constant 0 : i32
    %12 = vector.broadcast %c0_i32 : i32 to vector<8x4xi32>
    %13 = arith.cmpi eq, %10, %12 : vector<8x4xi32>
    %14 = vector.extract_strided_slice %9 {offsets = [0, 0], sizes = [8, 1], strides = [1, 1]} : vector<16x1xf32> to vector<8x1xf32>
    %15 = vector.shape_cast %14 : vector<8x1xf32> to vector<8x1xf32>
    %16 = vector.broadcast %15 : vector<8x1xf32> to vector<8x4xf32>
    %17 = arith.select %13, %16, %11 : vector<8x4xi1>, vector<8x4xf32>
    %c2_i32 = arith.constant 2 : i32
    %18 = vector.broadcast %c2_i32 : i32 to vector<8x4xi32>
    %19 = arith.cmpi eq, %10, %18 : vector<8x4xi32>
    %20 = vector.extract_strided_slice %4 {offsets = [0, 0], sizes = [8, 1], strides = [1, 1]} : vector<16x1xf32> to vector<8x1xf32>
    %21 = vector.shape_cast %20 : vector<8x1xf32> to vector<8x1xf32>
    %22 = vector.broadcast %21 : vector<8x1xf32> to vector<8x4xf32>
    %23 = arith.select %19, %22, %17 : vector<8x4xi1>, vector<8x4xf32>
    %c1_i32 = arith.constant 1 : i32
    %24 = vector.broadcast %c1_i32 : i32 to vector<8x4xi32>
    %25 = arith.cmpi eq, %10, %24 : vector<8x4xi32>
    %26 = vector.extract_strided_slice %9 {offsets = [8, 0], sizes = [8, 1], strides = [1, 1]} : vector<16x1xf32> to vector<8x1xf32>
    %27 = vector.shape_cast %26 : vector<8x1xf32> to vector<8x1xf32>
    %28 = vector.broadcast %27 : vector<8x1xf32> to vector<8x4xf32>
    %29 = arith.select %25, %28, %23 : vector<8x4xi1>, vector<8x4xf32>
    %c3_i32 = arith.constant 3 : i32
    %30 = vector.broadcast %c3_i32 : i32 to vector<8x4xi32>
    %31 = arith.cmpi eq, %10, %30 : vector<8x4xi32>
    %32 = vector.extract_strided_slice %4 {offsets = [8, 0], sizes = [8, 1], strides = [1, 1]} : vector<16x1xf32> to vector<8x1xf32>
    %33 = vector.shape_cast %32 : vector<8x1xf32> to vector<8x1xf32>
    %34 = vector.broadcast %33 : vector<8x1xf32> to vector<8x4xf32>
    %35 = arith.select %31, %34, %29 : vector<8x4xi1>, vector<8x4xf32>
    %c0_8 = arith.constant 0 : index
    %c0_9 = arith.constant 0 : index
    %36 = vector.load %arg6[%c0_8, %c0_9] : memref<2x8xf32, #tpu.memory_space<vmem>>, vector<2x8xf32>
    %cst_10 = arith.constant dense<0.000000e+00> : vector<2x4xf32>
    %37 = tpu.matmul %36, %35, %cst_10 {dimension_numbers = #tpu.dot_dimension_numbers<[1], [0], [0], [1], [0, 0, 1, 1], [], []>} : vector<2x8xf32>, vector<8x4xf32>, vector<2x4xf32> -> vector<2x4xf32>
    %cst_11 = arith.constant 0.000000e+00 : f32
    %38 = vector.broadcast %cst_11 : f32 to vector<2x4xf32>
    %39 = arith.maximumf %37, %38 : vector<2x4xf32>
    %c0_12 = arith.constant 0 : index
    %c0_13 = arith.constant 0 : index
    %40 = vector.load %arg7[%c0_12, %c0_13] : memref<8x2xf32, #tpu.memory_space<vmem>>, vector<8x2xf32>
    %cst_14 = arith.constant dense<0.000000e+00> : vector<8x4xf32>
    %41 = tpu.matmul %40, %39, %cst_14 {dimension_numbers = #tpu.dot_dimension_numbers<[1], [0], [0], [1], [0, 0, 1, 1], [], []>} : vector<8x2xf32>, vector<2x4xf32>, vector<8x4xf32> -> vector<8x4xf32>
    %42 = vector.extract_strided_slice %41 {offsets = [0, 0], sizes = [8, 2], strides = [1, 1]} : vector<8x4xf32> to vector<8x2xf32>
    %43 = vector.extract_strided_slice %41 {offsets = [0, 2], sizes = [8, 2], strides = [1, 1]} : vector<8x4xf32> to vector<8x2xf32>
    %44 = arith.addf %42, %43 : vector<8x2xf32>
    %45 = arith.negf %44 : vector<8x2xf32>
    %46 = math.exp %45 : vector<8x2xf32>
    %cst_15 = arith.constant 1.000000e+00 : f32
    %47 = vector.broadcast %cst_15 : f32 to vector<8x2xf32>
    %48 = arith.addf %47, %46 : vector<8x2xf32>
    %49 = arith.divf %47, %48 : vector<8x2xf32>
    %50 = tpu.iota {dimensions = array<i32: 0>} : vector<4x256xi32>
    %cst_16 = arith.constant 0.000000e+00 : f32
    %51 = vector.broadcast %cst_16 : f32 to vector<4x256xf32>
    %c0_17 = arith.constant 0 : index
    %c0_18 = arith.constant 0 : index
    %c0_19 = arith.constant 0 : index
    %52 = vector.load %arg1[%c0_17, %c0_18, %c0_19] : memref<2x8x256xf32, #tpu.memory_space<vmem>>, vector<1x8x256xf32>
    %53 = vector.shape_cast %52 : vector<1x8x256xf32> to vector<8x256xf32>
    %54 = vector.extract_strided_slice %49 {offsets = [0, 0], sizes = [8, 1], strides = [1, 1]} : vector<8x2xf32> to vector<8x1xf32>
    %55 = vector.broadcast %54 : vector<8x1xf32> to vector<8x256xf32>
    %56 = arith.mulf %53, %55 : vector<8x256xf32>
    %c0_i32_20 = arith.constant 0 : i32
    %57 = vector.broadcast %c0_i32_20 : i32 to vector<4x256xi32>
    %58 = arith.cmpi eq, %50, %57 : vector<4x256xi32>
    %cst_21 = arith.constant dense<0.000000e+00> : vector<256xf32>
    %59 = vector.multi_reduction <add>, %56, %cst_21 [0] : vector<8x256xf32> to vector<256xf32>
    %60 = vector.shape_cast %59 : vector<256xf32> to vector<1x256xf32>
    %cst_22 = arith.constant 8.000000e+00 : f32
    %61 = vector.broadcast %cst_22 : f32 to vector<1x256xf32>
    %62 = arith.divf %60, %61 : vector<1x256xf32>
    %63 = vector.shape_cast %62 : vector<1x256xf32> to vector<1x256xf32>
    %64 = vector.broadcast %63 : vector<1x256xf32> to vector<4x256xf32>
    %65 = arith.select %58, %64, %51 : vector<4x256xi1>, vector<4x256xf32>
    %c2_i32_23 = arith.constant 2 : i32
    %66 = vector.broadcast %c2_i32_23 : i32 to vector<4x256xi32>
    %67 = arith.cmpi eq, %50, %66 : vector<4x256xi32>
    %cst_24 = arith.constant dense<0xFF800000> : vector<256xf32>
    %68 = vector.multi_reduction <maximumf>, %56, %cst_24 [0] : vector<8x256xf32> to vector<256xf32>
    %69 = vector.shape_cast %68 : vector<256xf32> to vector<1x256xf32>
    %70 = vector.shape_cast %69 : vector<1x256xf32> to vector<1x256xf32>
    %71 = vector.broadcast %70 : vector<1x256xf32> to vector<4x256xf32>
    %72 = arith.select %67, %71, %65 : vector<4x256xi1>, vector<4x256xf32>
    %c1 = arith.constant 1 : index
    %c0_25 = arith.constant 0 : index
    %c0_26 = arith.constant 0 : index
    %73 = vector.load %arg1[%c1, %c0_25, %c0_26] : memref<2x8x256xf32, #tpu.memory_space<vmem>>, vector<1x8x256xf32>
    %74 = vector.shape_cast %73 : vector<1x8x256xf32> to vector<8x256xf32>
    %75 = vector.extract_strided_slice %49 {offsets = [0, 1], sizes = [8, 1], strides = [1, 1]} : vector<8x2xf32> to vector<8x1xf32>
    %76 = vector.broadcast %75 : vector<8x1xf32> to vector<8x256xf32>
    %77 = arith.mulf %74, %76 : vector<8x256xf32>
    %c1_i32_27 = arith.constant 1 : i32
    %78 = vector.broadcast %c1_i32_27 : i32 to vector<4x256xi32>
    %79 = arith.cmpi eq, %50, %78 : vector<4x256xi32>
    %cst_28 = arith.constant dense<0.000000e+00> : vector<256xf32>
    %80 = vector.multi_reduction <add>, %77, %cst_28 [0] : vector<8x256xf32> to vector<256xf32>
    %81 = vector.shape_cast %80 : vector<256xf32> to vector<1x256xf32>
    %cst_29 = arith.constant 8.000000e+00 : f32
    %82 = vector.broadcast %cst_29 : f32 to vector<1x256xf32>
    %83 = arith.divf %81, %82 : vector<1x256xf32>
    %84 = vector.shape_cast %83 : vector<1x256xf32> to vector<1x256xf32>
    %85 = vector.broadcast %84 : vector<1x256xf32> to vector<4x256xf32>
    %86 = arith.select %79, %85, %72 : vector<4x256xi1>, vector<4x256xf32>
    %c3_i32_30 = arith.constant 3 : i32
    %87 = vector.broadcast %c3_i32_30 : i32 to vector<4x256xi32>
    %88 = arith.cmpi eq, %50, %87 : vector<4x256xi32>
    %cst_31 = arith.constant dense<0xFF800000> : vector<256xf32>
    %89 = vector.multi_reduction <maximumf>, %77, %cst_31 [0] : vector<8x256xf32> to vector<256xf32>
    %90 = vector.shape_cast %89 : vector<256xf32> to vector<1x256xf32>
    %91 = vector.shape_cast %90 : vector<1x256xf32> to vector<1x256xf32>
    %92 = vector.broadcast %91 : vector<1x256xf32> to vector<4x256xf32>
    %93 = arith.select %88, %92, %86 : vector<4x256xi1>, vector<4x256xf32>
    %cst_32 = arith.constant 0.000000e+00 : f32
    %94 = vector.broadcast %cst_32 : f32 to vector<4x256xf32>
    %cst_33 = arith.constant 0.000000e+00 : f32
    %95 = vector.broadcast %cst_33 : f32 to vector<4x256xf32>
    %c51_i32 = arith.constant 51 : i32
    %96 = tpu.dynamic_rotate %93 by %c51_i32 dim 1 : vector<4x256xf32>, i32 -> vector<4x256xf32>
    %c0_34 = arith.constant 0 : index
    %c0_35 = arith.constant 0 : index
    %c0_36 = arith.constant 0 : index
    %97 = vector.load %arg5[%c0_34, %c0_35, %c0_36] : memref<49x4x256xf32, #tpu.memory_space<vmem>>, vector<1x4x256xf32>
    %98 = vector.shape_cast %97 : vector<1x4x256xf32> to vector<4x256xf32>
    %99 = arith.mulf %98, %96 : vector<4x256xf32>
    %100 = arith.addf %94, %99 : vector<4x256xf32>
    %c50_i32 = arith.constant 50 : i32
    %101 = tpu.dynamic_rotate %93 by %c50_i32 dim 1 : vector<4x256xf32>, i32 -> vector<4x256xf32>
    %c1_37 = arith.constant 1 : index
    %c0_38 = arith.constant 0 : index
    %c0_39 = arith.constant 0 : index
    %102 = vector.load %arg5[%c1_37, %c0_38, %c0_39] : memref<49x4x256xf32, #tpu.memory_space<vmem>>, vector<1x4x256xf32>
    %103 = vector.shape_cast %102 : vector<1x4x256xf32> to vector<4x256xf32>
    %104 = arith.mulf %103, %101 : vector<4x256xf32>
    %105 = arith.addf %95, %104 : vector<4x256xf32>
    %c49_i32 = arith.constant 49 : i32
    %106 = tpu.dynamic_rotate %93 by %c49_i32 dim 1 : vector<4x256xf32>, i32 -> vector<4x256xf32>
    %c2 = arith.constant 2 : index
    %c0_40 = arith.constant 0 : index
    %c0_41 = arith.constant 0 : index
    %107 = vector.load %arg5[%c2, %c0_40, %c0_41] : memref<49x4x256xf32, #tpu.memory_space<vmem>>, vector<1x4x256xf32>
    %108 = vector.shape_cast %107 : vector<1x4x256xf32> to vector<4x256xf32>
    %109 = arith.mulf %108, %106 : vector<4x256xf32>
    %110 = arith.addf %100, %109 : vector<4x256xf32>
    %c48_i32 = arith.constant 48 : i32
    %111 = tpu.dynamic_rotate %93 by %c48_i32 dim 1 : vector<4x256xf32>, i32 -> vector<4x256xf32>
    %c3 = arith.constant 3 : index
    %c0_42 = arith.constant 0 : index
    %c0_43 = arith.constant 0 : index
    %112 = vector.load %arg5[%c3, %c0_42, %c0_43] : memref<49x4x256xf32, #tpu.memory_space<vmem>>, vector<1x4x256xf32>
    %113 = vector.shape_cast %112 : vector<1x4x256xf32> to vector<4x256xf32>
    %114 = arith.mulf %113, %111 : vector<4x256xf32>
    %115 = arith.addf %105, %114 : vector<4x256xf32>
    %c47_i32 = arith.constant 47 : i32
    %116 = tpu.dynamic_rotate %93 by %c47_i32 dim 1 : vector<4x256xf32>, i32 -> vector<4x256xf32>
    %c4 = arith.constant 4 : index
    %c0_44 = arith.constant 0 : index
    %c0_45 = arith.constant 0 : index
    %117 = vector.load %arg5[%c4, %c0_44, %c0_45] : memref<49x4x256xf32, #tpu.memory_space<vmem>>, vector<1x4x256xf32>
    %118 = vector.shape_cast %117 : vector<1x4x256xf32> to vector<4x256xf32>
    %119 = arith.mulf %118, %116 : vector<4x256xf32>
    %120 = arith.addf %110, %119 : vector<4x256xf32>
    %c46_i32 = arith.constant 46 : i32
    %121 = tpu.dynamic_rotate %93 by %c46_i32 dim 1 : vector<4x256xf32>, i32 -> vector<4x256xf32>
    %c5 = arith.constant 5 : index
    %c0_46 = arith.constant 0 : index
    %c0_47 = arith.constant 0 : index
    %122 = vector.load %arg5[%c5, %c0_46, %c0_47] : memref<49x4x256xf32, #tpu.memory_space<vmem>>, vector<1x4x256xf32>
    %123 = vector.shape_cast %122 : vector<1x4x256xf32> to vector<4x256xf32>
    %124 = arith.mulf %123, %121 : vector<4x256xf32>
    %125 = arith.addf %115, %124 : vector<4x256xf32>
    %c45_i32 = arith.constant 45 : i32
    %126 = tpu.dynamic_rotate %93 by %c45_i32 dim 1 : vector<4x256xf32>, i32 -> vector<4x256xf32>
    %c6 = arith.constant 6 : index
    %c0_48 = arith.constant 0 : index
    %c0_49 = arith.constant 0 : index
    %127 = vector.load %arg5[%c6, %c0_48, %c0_49] : memref<49x4x256xf32, #tpu.memory_space<vmem>>, vector<1x4x256xf32>
    %128 = vector.shape_cast %127 : vector<1x4x256xf32> to vector<4x256xf32>
    %129 = arith.mulf %128, %126 : vector<4x256xf32>
    %130 = arith.addf %120, %129 : vector<4x256xf32>
    %c35_i32 = arith.constant 35 : i32
    %131 = tpu.dynamic_rotate %93 by %c35_i32 dim 1 : vector<4x256xf32>, i32 -> vector<4x256xf32>
    %c7 = arith.constant 7 : index
    %c0_50 = arith.constant 0 : index
    %c0_51 = arith.constant 0 : index
    %132 = vector.load %arg5[%c7, %c0_50, %c0_51] : memref<49x4x256xf32, #tpu.memory_space<vmem>>, vector<1x4x256xf32>
    %133 = vector.shape_cast %132 : vector<1x4x256xf32> to vector<4x256xf32>
    %134 = arith.mulf %133, %131 : vector<4x256xf32>
    %135 = arith.addf %125, %134 : vector<4x256xf32>
    %c34_i32 = arith.constant 34 : i32
    %136 = tpu.dynamic_rotate %93 by %c34_i32 dim 1 : vector<4x256xf32>, i32 -> vector<4x256xf32>
    %c8 = arith.constant 8 : index
    %c0_52 = arith.constant 0 : index
    %c0_53 = arith.constant 0 : index
    %137 = vector.load %arg5[%c8, %c0_52, %c0_53] : memref<49x4x256xf32, #tpu.memory_space<vmem>>, vector<1x4x256xf32>
    %138 = vector.shape_cast %137 : vector<1x4x256xf32> to vector<4x256xf32>
    %139 = arith.mulf %138, %136 : vector<4x256xf32>
    %140 = arith.addf %130, %139 : vector<4x256xf32>
    %c33_i32 = arith.constant 33 : i32
    %141 = tpu.dynamic_rotate %93 by %c33_i32 dim 1 : vector<4x256xf32>, i32 -> vector<4x256xf32>
    %c9 = arith.constant 9 : index
    %c0_54 = arith.constant 0 : index
    %c0_55 = arith.constant 0 : index
    %142 = vector.load %arg5[%c9, %c0_54, %c0_55] : memref<49x4x256xf32, #tpu.memory_space<vmem>>, vector<1x4x256xf32>
    %143 = vector.shape_cast %142 : vector<1x4x256xf32> to vector<4x256xf32>
    %144 = arith.mulf %143, %141 : vector<4x256xf32>
    %145 = arith.addf %135, %144 : vector<4x256xf32>
    %c32_i32 = arith.constant 32 : i32
    %146 = tpu.dynamic_rotate %93 by %c32_i32 dim 1 : vector<4x256xf32>, i32 -> vector<4x256xf32>
    %c10 = arith.constant 10 : index
    %c0_56 = arith.constant 0 : index
    %c0_57 = arith.constant 0 : index
    %147 = vector.load %arg5[%c10, %c0_56, %c0_57] : memref<49x4x256xf32, #tpu.memory_space<vmem>>, vector<1x4x256xf32>
    %148 = vector.shape_cast %147 : vector<1x4x256xf32> to vector<4x256xf32>
    %149 = arith.mulf %148, %146 : vector<4x256xf32>
    %150 = arith.addf %140, %149 : vector<4x256xf32>
    %c31_i32 = arith.constant 31 : i32
    %151 = tpu.dynamic_rotate %93 by %c31_i32 dim 1 : vector<4x256xf32>, i32 -> vector<4x256xf32>
    %c11 = arith.constant 11 : index
    %c0_58 = arith.constant 0 : index
    %c0_59 = arith.constant 0 : index
    %152 = vector.load %arg5[%c11, %c0_58, %c0_59] : memref<49x4x256xf32, #tpu.memory_space<vmem>>, vector<1x4x256xf32>
    %153 = vector.shape_cast %152 : vector<1x4x256xf32> to vector<4x256xf32>
    %154 = arith.mulf %153, %151 : vector<4x256xf32>
    %155 = arith.addf %145, %154 : vector<4x256xf32>
    %c30_i32 = arith.constant 30 : i32
    %156 = tpu.dynamic_rotate %93 by %c30_i32 dim 1 : vector<4x256xf32>, i32 -> vector<4x256xf32>
    %c12 = arith.constant 12 : index
    %c0_60 = arith.constant 0 : index
    %c0_61 = arith.constant 0 : index
    %157 = vector.load %arg5[%c12, %c0_60, %c0_61] : memref<49x4x256xf32, #tpu.memory_space<vmem>>, vector<1x4x256xf32>
    %158 = vector.shape_cast %157 : vector<1x4x256xf32> to vector<4x256xf32>
    %159 = arith.mulf %158, %156 : vector<4x256xf32>
    %160 = arith.addf %150, %159 : vector<4x256xf32>
    %c29_i32 = arith.constant 29 : i32
    %161 = tpu.dynamic_rotate %93 by %c29_i32 dim 1 : vector<4x256xf32>, i32 -> vector<4x256xf32>
    %c13 = arith.constant 13 : index
    %c0_62 = arith.constant 0 : index
    %c0_63 = arith.constant 0 : index
    %162 = vector.load %arg5[%c13, %c0_62, %c0_63] : memref<49x4x256xf32, #tpu.memory_space<vmem>>, vector<1x4x256xf32>
    %163 = vector.shape_cast %162 : vector<1x4x256xf32> to vector<4x256xf32>
    %164 = arith.mulf %163, %161 : vector<4x256xf32>
    %165 = arith.addf %155, %164 : vector<4x256xf32>
    %c19_i32 = arith.constant 19 : i32
    %166 = tpu.dynamic_rotate %93 by %c19_i32 dim 1 : vector<4x256xf32>, i32 -> vector<4x256xf32>
    %c14 = arith.constant 14 : index
    %c0_64 = arith.constant 0 : index
    %c0_65 = arith.constant 0 : index
    %167 = vector.load %arg5[%c14, %c0_64, %c0_65] : memref<49x4x256xf32, #tpu.memory_space<vmem>>, vector<1x4x256xf32>
    %168 = vector.shape_cast %167 : vector<1x4x256xf32> to vector<4x256xf32>
    %169 = arith.mulf %168, %166 : vector<4x256xf32>
    %170 = arith.addf %160, %169 : vector<4x256xf32>
    %c18_i32 = arith.constant 18 : i32
    %171 = tpu.dynamic_rotate %93 by %c18_i32 dim 1 : vector<4x256xf32>, i32 -> vector<4x256xf32>
    %c15 = arith.constant 15 : index
    %c0_66 = arith.constant 0 : index
    %c0_67 = arith.constant 0 : index
    %172 = vector.load %arg5[%c15, %c0_66, %c0_67] : memref<49x4x256xf32, #tpu.memory_space<vmem>>, vector<1x4x256xf32>
    %173 = vector.shape_cast %172 : vector<1x4x256xf32> to vector<4x256xf32>
    %174 = arith.mulf %173, %171 : vector<4x256xf32>
    %175 = arith.addf %165, %174 : vector<4x256xf32>
    %c17_i32 = arith.constant 17 : i32
    %176 = tpu.dynamic_rotate %93 by %c17_i32 dim 1 : vector<4x256xf32>, i32 -> vector<4x256xf32>
    %c16 = arith.constant 16 : index
    %c0_68 = arith.constant 0 : index
    %c0_69 = arith.constant 0 : index
    %177 = vector.load %arg5[%c16, %c0_68, %c0_69] : memref<49x4x256xf32, #tpu.memory_space<vmem>>, vector<1x4x256xf32>
    %178 = vector.shape_cast %177 : vector<1x4x256xf32> to vector<4x256xf32>
    %179 = arith.mulf %178, %176 : vector<4x256xf32>
    %180 = arith.addf %170, %179 : vector<4x256xf32>
    %c16_i32 = arith.constant 16 : i32
    %181 = tpu.dynamic_rotate %93 by %c16_i32 dim 1 : vector<4x256xf32>, i32 -> vector<4x256xf32>
    %c17 = arith.constant 17 : index
    %c0_70 = arith.constant 0 : index
    %c0_71 = arith.constant 0 : index
    %182 = vector.load %arg5[%c17, %c0_70, %c0_71] : memref<49x4x256xf32, #tpu.memory_space<vmem>>, vector<1x4x256xf32>
    %183 = vector.shape_cast %182 : vector<1x4x256xf32> to vector<4x256xf32>
    %184 = arith.mulf %183, %181 : vector<4x256xf32>
    %185 = arith.addf %175, %184 : vector<4x256xf32>
    %c15_i32 = arith.constant 15 : i32
    %186 = tpu.dynamic_rotate %93 by %c15_i32 dim 1 : vector<4x256xf32>, i32 -> vector<4x256xf32>
    %c18 = arith.constant 18 : index
    %c0_72 = arith.constant 0 : index
    %c0_73 = arith.constant 0 : index
    %187 = vector.load %arg5[%c18, %c0_72, %c0_73] : memref<49x4x256xf32, #tpu.memory_space<vmem>>, vector<1x4x256xf32>
    %188 = vector.shape_cast %187 : vector<1x4x256xf32> to vector<4x256xf32>
    %189 = arith.mulf %188, %186 : vector<4x256xf32>
    %190 = arith.addf %180, %189 : vector<4x256xf32>
    %c14_i32 = arith.constant 14 : i32
    %191 = tpu.dynamic_rotate %93 by %c14_i32 dim 1 : vector<4x256xf32>, i32 -> vector<4x256xf32>
    %c19 = arith.constant 19 : index
    %c0_74 = arith.constant 0 : index
    %c0_75 = arith.constant 0 : index
    %192 = vector.load %arg5[%c19, %c0_74, %c0_75] : memref<49x4x256xf32, #tpu.memory_space<vmem>>, vector<1x4x256xf32>
    %193 = vector.shape_cast %192 : vector<1x4x256xf32> to vector<4x256xf32>
    %194 = arith.mulf %193, %191 : vector<4x256xf32>
    %195 = arith.addf %185, %194 : vector<4x256xf32>
    %c13_i32 = arith.constant 13 : i32
    %196 = tpu.dynamic_rotate %93 by %c13_i32 dim 1 : vector<4x256xf32>, i32 -> vector<4x256xf32>
    %c20 = arith.constant 20 : index
    %c0_76 = arith.constant 0 : index
    %c0_77 = arith.constant 0 : index
    %197 = vector.load %arg5[%c20, %c0_76, %c0_77] : memref<49x4x256xf32, #tpu.memory_space<vmem>>, vector<1x4x256xf32>
    %198 = vector.shape_cast %197 : vector<1x4x256xf32> to vector<4x256xf32>
    %199 = arith.mulf %198, %196 : vector<4x256xf32>
    %200 = arith.addf %190, %199 : vector<4x256xf32>
    %c3_i32_78 = arith.constant 3 : i32
    %201 = tpu.dynamic_rotate %93 by %c3_i32_78 dim 1 : vector<4x256xf32>, i32 -> vector<4x256xf32>
    %c21 = arith.constant 21 : index
    %c0_79 = arith.constant 0 : index
    %c0_80 = arith.constant 0 : index
    %202 = vector.load %arg5[%c21, %c0_79, %c0_80] : memref<49x4x256xf32, #tpu.memory_space<vmem>>, vector<1x4x256xf32>
    %203 = vector.shape_cast %202 : vector<1x4x256xf32> to vector<4x256xf32>
    %204 = arith.mulf %203, %201 : vector<4x256xf32>
    %205 = arith.addf %195, %204 : vector<4x256xf32>
    %c2_i32_81 = arith.constant 2 : i32
    %206 = tpu.dynamic_rotate %93 by %c2_i32_81 dim 1 : vector<4x256xf32>, i32 -> vector<4x256xf32>
    %c22 = arith.constant 22 : index
    %c0_82 = arith.constant 0 : index
    %c0_83 = arith.constant 0 : index
    %207 = vector.load %arg5[%c22, %c0_82, %c0_83] : memref<49x4x256xf32, #tpu.memory_space<vmem>>, vector<1x4x256xf32>
    %208 = vector.shape_cast %207 : vector<1x4x256xf32> to vector<4x256xf32>
    %209 = arith.mulf %208, %206 : vector<4x256xf32>
    %210 = arith.addf %200, %209 : vector<4x256xf32>
    %c1_i32_84 = arith.constant 1 : i32
    %211 = tpu.dynamic_rotate %93 by %c1_i32_84 dim 1 : vector<4x256xf32>, i32 -> vector<4x256xf32>
    %c23 = arith.constant 23 : index
    %c0_85 = arith.constant 0 : index
    %c0_86 = arith.constant 0 : index
    %212 = vector.load %arg5[%c23, %c0_85, %c0_86] : memref<49x4x256xf32, #tpu.memory_space<vmem>>, vector<1x4x256xf32>
    %213 = vector.shape_cast %212 : vector<1x4x256xf32> to vector<4x256xf32>
    %214 = arith.mulf %213, %211 : vector<4x256xf32>
    %215 = arith.addf %205, %214 : vector<4x256xf32>
    %c24 = arith.constant 24 : index
    %c0_87 = arith.constant 0 : index
    %c0_88 = arith.constant 0 : index
    %216 = vector.load %arg5[%c24, %c0_87, %c0_88] : memref<49x4x256xf32, #tpu.memory_space<vmem>>, vector<1x4x256xf32>
    %217 = vector.shape_cast %216 : vector<1x4x256xf32> to vector<4x256xf32>
    %218 = arith.mulf %217, %93 : vector<4x256xf32>
    %219 = arith.addf %210, %218 : vector<4x256xf32>
    %c255_i32 = arith.constant 255 : i32
    %220 = tpu.dynamic_rotate %93 by %c255_i32 dim 1 : vector<4x256xf32>, i32 -> vector<4x256xf32>
    %c25 = arith.constant 25 : index
    %c0_89 = arith.constant 0 : index
    %c0_90 = arith.constant 0 : index
    %221 = vector.load %arg5[%c25, %c0_89, %c0_90] : memref<49x4x256xf32, #tpu.memory_space<vmem>>, vector<1x4x256xf32>
    %222 = vector.shape_cast %221 : vector<1x4x256xf32> to vector<4x256xf32>
    %223 = arith.mulf %222, %220 : vector<4x256xf32>
    %224 = arith.addf %215, %223 : vector<4x256xf32>
    %c254_i32 = arith.constant 254 : i32
    %225 = tpu.dynamic_rotate %93 by %c254_i32 dim 1 : vector<4x256xf32>, i32 -> vector<4x256xf32>
    %c26 = arith.constant 26 : index
    %c0_91 = arith.constant 0 : index
    %c0_92 = arith.constant 0 : index
    %226 = vector.load %arg5[%c26, %c0_91, %c0_92] : memref<49x4x256xf32, #tpu.memory_space<vmem>>, vector<1x4x256xf32>
    %227 = vector.shape_cast %226 : vector<1x4x256xf32> to vector<4x256xf32>
    %228 = arith.mulf %227, %225 : vector<4x256xf32>
    %229 = arith.addf %219, %228 : vector<4x256xf32>
    %c253_i32 = arith.constant 253 : i32
    %230 = tpu.dynamic_rotate %93 by %c253_i32 dim 1 : vector<4x256xf32>, i32 -> vector<4x256xf32>
    %c27 = arith.constant 27 : index
    %c0_93 = arith.constant 0 : index
    %c0_94 = arith.constant 0 : index
    %231 = vector.load %arg5[%c27, %c0_93, %c0_94] : memref<49x4x256xf32, #tpu.memory_space<vmem>>, vector<1x4x256xf32>
    %232 = vector.shape_cast %231 : vector<1x4x256xf32> to vector<4x256xf32>
    %233 = arith.mulf %232, %230 : vector<4x256xf32>
    %234 = arith.addf %224, %233 : vector<4x256xf32>
    %c243_i32 = arith.constant 243 : i32
    %235 = tpu.dynamic_rotate %93 by %c243_i32 dim 1 : vector<4x256xf32>, i32 -> vector<4x256xf32>
    %c28 = arith.constant 28 : index
    %c0_95 = arith.constant 0 : index
    %c0_96 = arith.constant 0 : index
    %236 = vector.load %arg5[%c28, %c0_95, %c0_96] : memref<49x4x256xf32, #tpu.memory_space<vmem>>, vector<1x4x256xf32>
    %237 = vector.shape_cast %236 : vector<1x4x256xf32> to vector<4x256xf32>
    %238 = arith.mulf %237, %235 : vector<4x256xf32>
    %239 = arith.addf %229, %238 : vector<4x256xf32>
    %c242_i32 = arith.constant 242 : i32
    %240 = tpu.dynamic_rotate %93 by %c242_i32 dim 1 : vector<4x256xf32>, i32 -> vector<4x256xf32>
    %c29 = arith.constant 29 : index
    %c0_97 = arith.constant 0 : index
    %c0_98 = arith.constant 0 : index
    %241 = vector.load %arg5[%c29, %c0_97, %c0_98] : memref<49x4x256xf32, #tpu.memory_space<vmem>>, vector<1x4x256xf32>
    %242 = vector.shape_cast %241 : vector<1x4x256xf32> to vector<4x256xf32>
    %243 = arith.mulf %242, %240 : vector<4x256xf32>
    %244 = arith.addf %234, %243 : vector<4x256xf32>
    %c241_i32 = arith.constant 241 : i32
    %245 = tpu.dynamic_rotate %93 by %c241_i32 dim 1 : vector<4x256xf32>, i32 -> vector<4x256xf32>
    %c30 = arith.constant 30 : index
    %c0_99 = arith.constant 0 : index
    %c0_100 = arith.constant 0 : index
    %246 = vector.load %arg5[%c30, %c0_99, %c0_100] : memref<49x4x256xf32, #tpu.memory_space<vmem>>, vector<1x4x256xf32>
    %247 = vector.shape_cast %246 : vector<1x4x256xf32> to vector<4x256xf32>
    %248 = arith.mulf %247, %245 : vector<4x256xf32>
    %249 = arith.addf %239, %248 : vector<4x256xf32>
    %c240_i32 = arith.constant 240 : i32
    %250 = tpu.dynamic_rotate %93 by %c240_i32 dim 1 : vector<4x256xf32>, i32 -> vector<4x256xf32>
    %c31 = arith.constant 31 : index
    %c0_101 = arith.constant 0 : index
    %c0_102 = arith.constant 0 : index
    %251 = vector.load %arg5[%c31, %c0_101, %c0_102] : memref<49x4x256xf32, #tpu.memory_space<vmem>>, vector<1x4x256xf32>
    %252 = vector.shape_cast %251 : vector<1x4x256xf32> to vector<4x256xf32>
    %253 = arith.mulf %252, %250 : vector<4x256xf32>
    %254 = arith.addf %244, %253 : vector<4x256xf32>
    %c239_i32 = arith.constant 239 : i32
    %255 = tpu.dynamic_rotate %93 by %c239_i32 dim 1 : vector<4x256xf32>, i32 -> vector<4x256xf32>
    %c32 = arith.constant 32 : index
    %c0_103 = arith.constant 0 : index
    %c0_104 = arith.constant 0 : index
    %256 = vector.load %arg5[%c32, %c0_103, %c0_104] : memref<49x4x256xf32, #tpu.memory_space<vmem>>, vector<1x4x256xf32>
    %257 = vector.shape_cast %256 : vector<1x4x256xf32> to vector<4x256xf32>
    %258 = arith.mulf %257, %255 : vector<4x256xf32>
    %259 = arith.addf %249, %258 : vector<4x256xf32>
    %c238_i32 = arith.constant 238 : i32
    %260 = tpu.dynamic_rotate %93 by %c238_i32 dim 1 : vector<4x256xf32>, i32 -> vector<4x256xf32>
    %c33 = arith.constant 33 : index
    %c0_105 = arith.constant 0 : index
    %c0_106 = arith.constant 0 : index
    %261 = vector.load %arg5[%c33, %c0_105, %c0_106] : memref<49x4x256xf32, #tpu.memory_space<vmem>>, vector<1x4x256xf32>
    %262 = vector.shape_cast %261 : vector<1x4x256xf32> to vector<4x256xf32>
    %263 = arith.mulf %262, %260 : vector<4x256xf32>
    %264 = arith.addf %254, %263 : vector<4x256xf32>
    %c237_i32 = arith.constant 237 : i32
    %265 = tpu.dynamic_rotate %93 by %c237_i32 dim 1 : vector<4x256xf32>, i32 -> vector<4x256xf32>
    %c34 = arith.constant 34 : index
    %c0_107 = arith.constant 0 : index
    %c0_108 = arith.constant 0 : index
    %266 = vector.load %arg5[%c34, %c0_107, %c0_108] : memref<49x4x256xf32, #tpu.memory_space<vmem>>, vector<1x4x256xf32>
    %267 = vector.shape_cast %266 : vector<1x4x256xf32> to vector<4x256xf32>
    %268 = arith.mulf %267, %265 : vector<4x256xf32>
    %269 = arith.addf %259, %268 : vector<4x256xf32>
    %c227_i32 = arith.constant 227 : i32
    %270 = tpu.dynamic_rotate %93 by %c227_i32 dim 1 : vector<4x256xf32>, i32 -> vector<4x256xf32>
    %c35 = arith.constant 35 : index
    %c0_109 = arith.constant 0 : index
    %c0_110 = arith.constant 0 : index
    %271 = vector.load %arg5[%c35, %c0_109, %c0_110] : memref<49x4x256xf32, #tpu.memory_space<vmem>>, vector<1x4x256xf32>
    %272 = vector.shape_cast %271 : vector<1x4x256xf32> to vector<4x256xf32>
    %273 = arith.mulf %272, %270 : vector<4x256xf32>
    %274 = arith.addf %264, %273 : vector<4x256xf32>
    %c226_i32 = arith.constant 226 : i32
    %275 = tpu.dynamic_rotate %93 by %c226_i32 dim 1 : vector<4x256xf32>, i32 -> vector<4x256xf32>
    %c36 = arith.constant 36 : index
    %c0_111 = arith.constant 0 : index
    %c0_112 = arith.constant 0 : index
    %276 = vector.load %arg5[%c36, %c0_111, %c0_112] : memref<49x4x256xf32, #tpu.memory_space<vmem>>, vector<1x4x256xf32>
    %277 = vector.shape_cast %276 : vector<1x4x256xf32> to vector<4x256xf32>
    %278 = arith.mulf %277, %275 : vector<4x256xf32>
    %279 = arith.addf %269, %278 : vector<4x256xf32>
    %c225_i32 = arith.constant 225 : i32
    %280 = tpu.dynamic_rotate %93 by %c225_i32 dim 1 : vector<4x256xf32>, i32 -> vector<4x256xf32>
    %c37 = arith.constant 37 : index
    %c0_113 = arith.constant 0 : index
    %c0_114 = arith.constant 0 : index
    %281 = vector.load %arg5[%c37, %c0_113, %c0_114] : memref<49x4x256xf32, #tpu.memory_space<vmem>>, vector<1x4x256xf32>
    %282 = vector.shape_cast %281 : vector<1x4x256xf32> to vector<4x256xf32>
    %283 = arith.mulf %282, %280 : vector<4x256xf32>
    %284 = arith.addf %274, %283 : vector<4x256xf32>
    %c224_i32 = arith.constant 224 : i32
    %285 = tpu.dynamic_rotate %93 by %c224_i32 dim 1 : vector<4x256xf32>, i32 -> vector<4x256xf32>
    %c38 = arith.constant 38 : index
    %c0_115 = arith.constant 0 : index
    %c0_116 = arith.constant 0 : index
    %286 = vector.load %arg5[%c38, %c0_115, %c0_116] : memref<49x4x256xf32, #tpu.memory_space<vmem>>, vector<1x4x256xf32>
    %287 = vector.shape_cast %286 : vector<1x4x256xf32> to vector<4x256xf32>
    %288 = arith.mulf %287, %285 : vector<4x256xf32>
    %289 = arith.addf %279, %288 : vector<4x256xf32>
    %c223_i32 = arith.constant 223 : i32
    %290 = tpu.dynamic_rotate %93 by %c223_i32 dim 1 : vector<4x256xf32>, i32 -> vector<4x256xf32>
    %c39 = arith.constant 39 : index
    %c0_117 = arith.constant 0 : index
    %c0_118 = arith.constant 0 : index
    %291 = vector.load %arg5[%c39, %c0_117, %c0_118] : memref<49x4x256xf32, #tpu.memory_space<vmem>>, vector<1x4x256xf32>
    %292 = vector.shape_cast %291 : vector<1x4x256xf32> to vector<4x256xf32>
    %293 = arith.mulf %292, %290 : vector<4x256xf32>
    %294 = arith.addf %284, %293 : vector<4x256xf32>
    %c222_i32 = arith.constant 222 : i32
    %295 = tpu.dynamic_rotate %93 by %c222_i32 dim 1 : vector<4x256xf32>, i32 -> vector<4x256xf32>
    %c40 = arith.constant 40 : index
    %c0_119 = arith.constant 0 : index
    %c0_120 = arith.constant 0 : index
    %296 = vector.load %arg5[%c40, %c0_119, %c0_120] : memref<49x4x256xf32, #tpu.memory_space<vmem>>, vector<1x4x256xf32>
    %297 = vector.shape_cast %296 : vector<1x4x256xf32> to vector<4x256xf32>
    %298 = arith.mulf %297, %295 : vector<4x256xf32>
    %299 = arith.addf %289, %298 : vector<4x256xf32>
    %c221_i32 = arith.constant 221 : i32
    %300 = tpu.dynamic_rotate %93 by %c221_i32 dim 1 : vector<4x256xf32>, i32 -> vector<4x256xf32>
    %c41 = arith.constant 41 : index
    %c0_121 = arith.constant 0 : index
    %c0_122 = arith.constant 0 : index
    %301 = vector.load %arg5[%c41, %c0_121, %c0_122] : memref<49x4x256xf32, #tpu.memory_space<vmem>>, vector<1x4x256xf32>
    %302 = vector.shape_cast %301 : vector<1x4x256xf32> to vector<4x256xf32>
    %303 = arith.mulf %302, %300 : vector<4x256xf32>
    %304 = arith.addf %294, %303 : vector<4x256xf32>
    %c211_i32 = arith.constant 211 : i32
    %305 = tpu.dynamic_rotate %93 by %c211_i32 dim 1 : vector<4x256xf32>, i32 -> vector<4x256xf32>
    %c42 = arith.constant 42 : index
    %c0_123 = arith.constant 0 : index
    %c0_124 = arith.constant 0 : index
    %306 = vector.load %arg5[%c42, %c0_123, %c0_124] : memref<49x4x256xf32, #tpu.memory_space<vmem>>, vector<1x4x256xf32>
    %307 = vector.shape_cast %306 : vector<1x4x256xf32> to vector<4x256xf32>
    %308 = arith.mulf %307, %305 : vector<4x256xf32>
    %309 = arith.addf %299, %308 : vector<4x256xf32>
    %c210_i32 = arith.constant 210 : i32
    %310 = tpu.dynamic_rotate %93 by %c210_i32 dim 1 : vector<4x256xf32>, i32 -> vector<4x256xf32>
    %c43 = arith.constant 43 : index
    %c0_125 = arith.constant 0 : index
    %c0_126 = arith.constant 0 : index
    %311 = vector.load %arg5[%c43, %c0_125, %c0_126] : memref<49x4x256xf32, #tpu.memory_space<vmem>>, vector<1x4x256xf32>
    %312 = vector.shape_cast %311 : vector<1x4x256xf32> to vector<4x256xf32>
    %313 = arith.mulf %312, %310 : vector<4x256xf32>
    %314 = arith.addf %304, %313 : vector<4x256xf32>
    %c209_i32 = arith.constant 209 : i32
    %315 = tpu.dynamic_rotate %93 by %c209_i32 dim 1 : vector<4x256xf32>, i32 -> vector<4x256xf32>
    %c44 = arith.constant 44 : index
    %c0_127 = arith.constant 0 : index
    %c0_128 = arith.constant 0 : index
    %316 = vector.load %arg5[%c44, %c0_127, %c0_128] : memref<49x4x256xf32, #tpu.memory_space<vmem>>, vector<1x4x256xf32>
    %317 = vector.shape_cast %316 : vector<1x4x256xf32> to vector<4x256xf32>
    %318 = arith.mulf %317, %315 : vector<4x256xf32>
    %319 = arith.addf %309, %318 : vector<4x256xf32>
    %c208_i32 = arith.constant 208 : i32
    %320 = tpu.dynamic_rotate %93 by %c208_i32 dim 1 : vector<4x256xf32>, i32 -> vector<4x256xf32>
    %c45 = arith.constant 45 : index
    %c0_129 = arith.constant 0 : index
    %c0_130 = arith.constant 0 : index
    %321 = vector.load %arg5[%c45, %c0_129, %c0_130] : memref<49x4x256xf32, #tpu.memory_space<vmem>>, vector<1x4x256xf32>
    %322 = vector.shape_cast %321 : vector<1x4x256xf32> to vector<4x256xf32>
    %323 = arith.mulf %322, %320 : vector<4x256xf32>
    %324 = arith.addf %314, %323 : vector<4x256xf32>
    %c207_i32 = arith.constant 207 : i32
    %325 = tpu.dynamic_rotate %93 by %c207_i32 dim 1 : vector<4x256xf32>, i32 -> vector<4x256xf32>
    %c46 = arith.constant 46 : index
    %c0_131 = arith.constant 0 : index
    %c0_132 = arith.constant 0 : index
    %326 = vector.load %arg5[%c46, %c0_131, %c0_132] : memref<49x4x256xf32, #tpu.memory_space<vmem>>, vector<1x4x256xf32>
    %327 = vector.shape_cast %326 : vector<1x4x256xf32> to vector<4x256xf32>
    %328 = arith.mulf %327, %325 : vector<4x256xf32>
    %329 = arith.addf %319, %328 : vector<4x256xf32>
    %c206_i32 = arith.constant 206 : i32
    %330 = tpu.dynamic_rotate %93 by %c206_i32 dim 1 : vector<4x256xf32>, i32 -> vector<4x256xf32>
    %c47 = arith.constant 47 : index
    %c0_133 = arith.constant 0 : index
    %c0_134 = arith.constant 0 : index
    %331 = vector.load %arg5[%c47, %c0_133, %c0_134] : memref<49x4x256xf32, #tpu.memory_space<vmem>>, vector<1x4x256xf32>
    %332 = vector.shape_cast %331 : vector<1x4x256xf32> to vector<4x256xf32>
    %333 = arith.mulf %332, %330 : vector<4x256xf32>
    %334 = arith.addf %324, %333 : vector<4x256xf32>
    %c205_i32 = arith.constant 205 : i32
    %335 = tpu.dynamic_rotate %93 by %c205_i32 dim 1 : vector<4x256xf32>, i32 -> vector<4x256xf32>
    %c48 = arith.constant 48 : index
    %c0_135 = arith.constant 0 : index
    %c0_136 = arith.constant 0 : index
    %336 = vector.load %arg5[%c48, %c0_135, %c0_136] : memref<49x4x256xf32, #tpu.memory_space<vmem>>, vector<1x4x256xf32>
    %337 = vector.shape_cast %336 : vector<1x4x256xf32> to vector<4x256xf32>
    %338 = arith.mulf %337, %335 : vector<4x256xf32>
    %339 = arith.addf %329, %338 : vector<4x256xf32>
    %340 = arith.addf %339, %334 : vector<4x256xf32>
    %341 = vector.extract_strided_slice %340 {offsets = [0, 0], sizes = [2, 256], strides = [1, 1]} : vector<4x256xf32> to vector<2x256xf32>
    %342 = vector.extract_strided_slice %340 {offsets = [2, 0], sizes = [2, 256], strides = [1, 1]} : vector<4x256xf32> to vector<2x256xf32>
    %343 = arith.addf %341, %342 : vector<2x256xf32>
    %344 = arith.negf %343 : vector<2x256xf32>
    %345 = math.exp %344 : vector<2x256xf32>
    %cst_137 = arith.constant 1.000000e+00 : f32
    %346 = vector.broadcast %cst_137 : f32 to vector<2x256xf32>
    %347 = arith.addf %346, %345 : vector<2x256xf32>
    %348 = arith.divf %346, %347 : vector<2x256xf32>
    %349 = vector.extract_strided_slice %348 {offsets = [0, 0], sizes = [1, 256], strides = [1, 1]} : vector<2x256xf32> to vector<1x256xf32>
    %350 = vector.broadcast %349 : vector<1x256xf32> to vector<8x256xf32>
    %351 = arith.mulf %56, %350 : vector<8x256xf32>
    %c0_138 = arith.constant 0 : index
    %c0_139 = arith.constant 0 : index
    %c0_140 = arith.constant 0 : index
    %352 = vector.load %arg8[%c0_138, %c0_139, %c0_140] : memref<2x8x256xf32, #tpu.memory_space<vmem>>, vector<1x8x256xf32>
    %353 = vector.shape_cast %352 : vector<1x8x256xf32> to vector<8x256xf32>
    %354 = vector.shape_cast %351 : vector<8x256xf32> to vector<1x8x256xf32>
    tpu.vector_store %arg8[%c0_138, %c0_139, %c0_140], %354 {strides = array<i32>} : memref<2x8x256xf32, #tpu.memory_space<vmem>>, vector<1x8x256xf32>,
    %355 = vector.extract_strided_slice %348 {offsets = [1, 0], sizes = [1, 256], strides = [1, 1]} : vector<2x256xf32> to vector<1x256xf32>
    %356 = vector.broadcast %355 : vector<1x256xf32> to vector<8x256xf32>
    %357 = arith.mulf %77, %356 : vector<8x256xf32>
    %c1_141 = arith.constant 1 : index
    %c0_142 = arith.constant 0 : index
    %c0_143 = arith.constant 0 : index
    %358 = vector.load %arg8[%c1_141, %c0_142, %c0_143] : memref<2x8x256xf32, #tpu.memory_space<vmem>>, vector<1x8x256xf32>
    %359 = vector.shape_cast %358 : vector<1x8x256xf32> to vector<8x256xf32>
    %360 = vector.shape_cast %357 : vector<8x256xf32> to vector<1x8x256xf32>
    tpu.vector_store %arg8[%c1_141, %c0_142, %c0_143], %360 {strides = array<i32>} : memref<2x8x256xf32, #tpu.memory_space<vmem>>, vector<1x8x256xf32>,
    return
  }
  func.func @transform_0(%arg0: i32) -> (i32, i32, i32) {
    %c0_i32 = arith.constant 0 : i32
    %c0_i32_0 = arith.constant 0 : i32
    %c0_i32_1 = arith.constant 0 : i32
    return %arg0, %c0_i32, %c0_i32_0 : i32, i32, i32
  }
  func.func @transform_1(%arg0: i32) -> (i32, i32) {
    %c0_i32 = arith.constant 0 : i32
    %c0_i32_0 = arith.constant 0 : i32
    return %arg0, %c0_i32 : i32, i32
  }
  func.func @transform_2(%arg0: i32) -> (i32, i32) {
    %c0_i32 = arith.constant 0 : i32
    %c0_i32_0 = arith.constant 0 : i32
    %c0_i32_1 = arith.constant 0 : i32
    return %c0_i32, %c0_i32_0 : i32, i32
  }
  func.func @transform_3(%arg0: i32) -> (i32, i32) {
    %c0_i32 = arith.constant 0 : i32
    %c0_i32_0 = arith.constant 0 : i32
    %c0_i32_1 = arith.constant 0 : i32
    return %c0_i32, %c0_i32_0 : i32, i32
  }
  func.func @transform_4(%arg0: i32) -> (i32, i32, i32) {
    %c0_i32 = arith.constant 0 : i32
    %c0_i32_0 = arith.constant 0 : i32
    %c0_i32_1 = arith.constant 0 : i32
    %c0_i32_2 = arith.constant 0 : i32
    return %c0_i32, %c0_i32_0, %c0_i32_1 : i32, i32, i32
  }
  func.func @transform_5(%arg0: i32) -> (i32, i32) {
    %c0_i32 = arith.constant 0 : i32
    %c0_i32_0 = arith.constant 0 : i32
    %c0_i32_1 = arith.constant 0 : i32
    return %c0_i32, %c0_i32_0 : i32, i32
  }
  func.func @transform_6(%arg0: i32) -> (i32, i32) {
    %c0_i32 = arith.constant 0 : i32
    %c0_i32_0 = arith.constant 0 : i32
    %c0_i32_1 = arith.constant 0 : i32
    return %c0_i32, %c0_i32_0 : i32, i32
  }
  func.func @transform_7(%arg0: i32) -> (i32, i32, i32) {
    %c0_i32 = arith.constant 0 : i32
    %c0_i32_0 = arith.constant 0 : i32
    %c0_i32_1 = arith.constant 0 : i32
    return %arg0, %c0_i32, %c0_i32_0 : i32, i32, i32
  }
}

</mosaic_0001>

<bundles_post_ra>
// kernel: tpu_custom_call.1
= control target key start
LH: loop header
LB: loop body
LE: loop exit
PB: predicated region body
PF: predicated region fallthrough
CT: control target
= control target key end

     0   :  { %12 = vsyncpa [#allocation3], 0  ;;  %s2020_s0 = inlined_call_operand.hbm [shape: f32[2,8,256], index: 0, kind: input, shape index: {}]   ;;  %s2021_s1 = inlined_call_operand.hbm [shape: f32[16,64], index: 1, kind: input, shape index: {}]   ;;  %s2022_s2 = inlined_call_operand.hbm [shape: f32[64,256], index: 2, kind: input, shape index: {}]   ;;  %s2023_s3 = inlined_call_operand.vmem [shape: f32[1,64], index: 3, kind: input, shape index: {}]   ;;  %s2024_s4 = inlined_call_operand.hbm [shape: f32[49,4,256], index: 4, kind: input, shape index: {}]   ;;  %s2025_s5 = inlined_call_operand.vmem [shape: f32[2,8], index: 5, kind: input, shape index: {}]   ;;  %s2026_s6 = inlined_call_operand.vmem [shape: f32[8,2], index: 6, kind: input, shape index: {}]   ;;  %s2027_s7 = inlined_call_operand.hbm [shape: f32[2,8,256], index: 7, kind: output, shape index: {}]  }
   0x1   :  { %13 = vsyncpa [#allocation6], 0 }
   0x2   :  { %14 = vsyncpa [#allocation9], 0 }
   0x3   :  { %15 = vsyncpa [#allocation4], 0  ;;  %s1498_s24 = smov [#allocation5]   ;;  %s1380_s28 = scalar_lea.hbm %s2021_s1, 256 }
   0x4   :  { %s33_s25 = sshll.u32 %s1498_s24, 4  ;;  %p1381_p0 = scmp.ne.s32.totalorder %s2021_s1, %s1380_s28  ;;  %s34_s25 = int_to_ptr.vmem [resolvable:$true] %s33_s25 }
   0x5   :  { %p1384_p1 = scmp.lt.u32.totalorder %s1380_s28, %s2021_s1 }
   0x7   :  { %p1386_p2 = pnand %p1384_p1, %p1381_p0 }
   0x9   :  { %1389 = shalt.err (!%p1386_p2)
}
   0xa   :  { %s1390_s10 = scalar_lea.vmem %s34_s25, 256  ;;  %p1395_p4 = scmp.lt.s32.totalorder %s34_s25, %s34_s25 }
   0xb   :  { %p1391_p3 = scmp.ne.s32.totalorder %s34_s25, %s1390_s10  ;;  %p1396_p5 = scmp.lt.s32.totalorder %s1390_s10, %s1390_s10 }
   0xd   :  { %p1397_p6 = por %p1396_p5, %p1395_p4 }
   0xf   :  { %p1398_p7 = pnand %p1397_p6, %p1391_p3 }
  0x11   :  { %1401 = shalt.err (!%p1398_p7)
}
  0x12   :  { %s1499_s11 = smov 128   ;;  %s1500_s12 = smov 8  }
  0x13   :  { %39 = dma.hbm_to_vmem [thread:$0]  %s2021_s1, 256, %s34_s25, [#allocation6], %s1499_s11, %s1499_s11, %s1500_s12  }
  0x14   :  { %s1501_s15 = smov [#allocation2]   ;;  %s1402_s19 = scalar_lea.hbm %s2020_s0, 512 }
  0x15   :  { %s21_s16 = sshll.u32 %s1501_s15, 4  ;;  %p1403_p8 = scmp.ne.s32.totalorder %s2020_s0, %s1402_s19  ;;  %s22_s16 = int_to_ptr.vmem [resolvable:$true] %s21_s16 }
  0x16   :  { %p1406_p9 = scmp.lt.u32.totalorder %s1402_s19, %s2020_s0 }
  0x18   :  { %p1408_p10 = pnand %p1406_p9, %p1403_p8 }
  0x1a   :  { %1411 = shalt.err (!%p1408_p10)
}
  0x1b   :  { %s1412_s24 = scalar_lea.vmem %s22_s16, 512  ;;  %p1417_p12 = scmp.lt.s32.totalorder %s22_s16, %s22_s16 }
  0x1c   :  { %p1413_p11 = scmp.ne.s32.totalorder %s22_s16, %s1412_s24  ;;  %p1418_p13 = scmp.lt.s32.totalorder %s1412_s24, %s1412_s24 }
  0x1e   :  { %p1419_p0 = por %p1418_p13, %p1417_p12 }
  0x20   :  { %p1420_p1 = pnand %p1419_p0, %p1413_p11 }
  0x22   :  { %1423 = shalt.err (!%p1420_p1)
}
  0x23   :  { %s1502_s1 = smov 256   ;;  %s1503_s25 = smov 16  }
  0x24   :  { %27 = dma.hbm_to_vmem [thread:$0]  %s2020_s0, 512, %s22_s16, [#allocation3], %s1502_s1, %s1502_s1, %s1503_s25  }
  0x25   :  { %s1504_s28 = smov [#allocation7]   ;;  %s1505_s30 = smov [#allocation8]  }
  0x26   :  { %s45_s29 = sshll.u32 %s1504_s28, 4  ;;  %s59_s8 = sshll.u32 %s1505_s30, 4  ;;  %s46_s29 = int_to_ptr.vmem [resolvable:$true] %s45_s29  ;;  %s1628_s8 = int_to_ptr.vmem [resolvable:$true] %s59_s8 }
  0x27   :  { %s1424_s13 = scalar_lea.hbm %s2022_s2, 2048 }
  0x28   :  { %p1425_p2 = scmp.ne.s32.totalorder %s2022_s2, %s1424_s13  ;;  %p1428_p3 = scmp.lt.u32.totalorder %s1424_s13, %s2022_s2 }
  0x2a   :  { %p1430_p4 = pnand %p1428_p3, %p1425_p2 }
  0x2c   :  { %1433 = shalt.err (!%p1430_p4)
}
  0x2d   :  { %s1434_s0 = scalar_lea.vmem %s46_s29, 2048  ;;  %p1439_p6 = scmp.lt.s32.totalorder %s46_s29, %s46_s29 }
  0x2e   :  { %p1435_p5 = scmp.ne.s32.totalorder %s46_s29, %s1434_s0  ;;  %p1440_p7 = scmp.lt.s32.totalorder %s1434_s0, %s1434_s0 }
  0x30   :  { %p1441_p8 = por %p1440_p7, %p1439_p6 }
  0x32   :  { %p1442_p9 = pnand %p1441_p8, %p1435_p5 }
  0x34   :  { %1445 = shalt.err (!%p1442_p9)
}
  0x35   :  { %51 = dma.hbm_to_vmem [thread:$0]  %s2022_s2, 2048, %s46_s29, [#allocation6], %s1502_s1, %s1502_s1, %s1503_s25  }
  0x36   :  { %s1446_s22 = scalar_lea.hbm %s2024_s4, 6272 }
  0x37   :  { %p1447_p10 = scmp.ne.s32.totalorder %s2024_s4, %s1446_s22  ;;  %p1450_p11 = scmp.lt.u32.totalorder %s1446_s22, %s2024_s4 }
  0x39   :  { %p1452_p12 = pnand %p1450_p11, %p1447_p10 }
  0x3b   :  { %1455 = shalt.err (!%p1452_p12)
}
  0x3c   :  { %s1456_s28 = scalar_lea.vmem %s1628_s8, 6272  ;;  %p1461_p0 = scmp.lt.s32.totalorder %s1628_s8, %s1628_s8 }
  0x3d   :  { %p1457_p13 = scmp.ne.s32.totalorder %s1628_s8, %s1456_s28  ;;  %p1462_p1 = scmp.lt.s32.totalorder %s1456_s28, %s1456_s28 }
  0x3f   :  { %p1463_p2 = por %p1462_p1, %p1461_p0 }
  0x41   :  { %p1464_p3 = pnand %p1463_p2, %p1457_p13 }
  0x43   :  { %1467 = shalt.err (!%p1464_p3)
}
  0x44   :  { %65 = dma.hbm_to_vmem [thread:$0]  %s2024_s4, 6272, %s1628_s8, [#allocation9], %s1499_s11, %s1499_s11, %s1500_s12  }
  0x45   :  { %1490 = dma.done.wait [#allocation3], 512  }
  0x46   :  { %1491 = vsyncadd [#allocation3], 4294966784 }
  0x47   :  { %1492 = dma.done.wait [#allocation6], 2304  }
  0x48   :  { %1493 = vsyncadd [#allocation6], 4294964992 }
  0x49   :  { %1494 = dma.done.wait [#allocation9], 6272  }
  0x4a   :  { %1495 = vsyncadd [#allocation9], 4294961024  ;;  %v1506_v0 = vmov 0.0   ;;  %v85_v1 = vld [vmem:[#allocation7 + $0x8] sm:$0xff]  ;;  %v87_v2 = vld [vmem:[#allocation7 + $0x18] sm:$0xff]  ;;  %vm100_vm0 = vcmask 523264   ;;  %v205_v38 = vlaneseq }
  0x4b   :  { %171 = vmatprep.mubr.f32.mxu0 %v1506_v0  ;;  %1283 = vmatprep.subr.mxu1 %v1506_v0  ;;  %v84_v3 = vld [vmem:[#allocation7] sm:$0xff]  ;;  %v1293_v4 = vpack.c.bf16 %v87_v2, %v85_v1  ;;  %v86_v5 = vld [vmem:[#allocation7 + $0x10] sm:$0xff]  ;;  %v89_v6 = vld [vmem:[#allocation7 + $0x28] sm:$0xff]  ;;  %vm1507_vm1 = vmmov 0   ;;  %vm216_vm6 = vcmask 64512   ;;  %vm296_vm7 = vcmask 1041408  }
  0x4c   :  { %v91_v7 = vld [vmem:[#allocation7 + $0x38] sm:$0xff]  ;;  %v1295_v8 = vpack.c.bf16 %v86_v5, %v84_v3  ;;  %v88_v10 = vld [vmem:[#allocation7 + $0x20] sm:$0xff]  ;;  %v90_v11 = vld [vmem:[#allocation7 + $0x30] sm:$0xff]  ;;  %1285 = vmatprep.mubr.msk.f32.mxu1 %vm1507_vm1, %v1506_v0  ;;  %v1678_v39 = vand.u32 127, %v205_v38  ;;  %vm292_vm8 = vcmask 15360   ;;  %v1509_v55 = vmov 0  }
  0x4d   :  { %v1297_v9 = vpack.c.bf16 %v91_v7, %v89_v6  ;;  %v93_v12 = vld [vmem:[#allocation7 + $0x48] sm:$0xff]  ;;  %1294 = vmatprep.subr.bf16.mxu0 %v1293_v4  ;;  %v95_v13 = vld [vmem:[#allocation7 + $0x58] sm:$0xff]  ;;  %v1299_v14 = vpack.c.bf16 %v90_v11, %v88_v10  ;;  %v92_v16 = vld [vmem:[#allocation7 + $0x40] sm:$0xff]  ;;  %1369 = vset.pattern.permute.xlu1 %v1509_v55  ;;  %v1510_v56 = vmov 1   ;;  %s1512_s9 = smov 50   ;;  %s1513_s10 = smov 49  }
  0x4e   :  { %1296 = vmatpush1.bf16.msra.mxu0 %v1295_v8  ;;  %v1301_v15 = vpack.c.bf16 %v95_v13, %v93_v12  ;;  %v94_v17 = vld [vmem:[#allocation7 + $0x50] sm:$0xff]  ;;  %v97_v18 = vld [vmem:[#allocation7 + $0x68] sm:$0xff]  ;;  %v99_v19 = vld [vmem:[#allocation7 + $0x78] sm:$0xff]  ;;  %vm207_vm2 = vcmp.eq.s32.totalorder %v1678_v39, 0  ;;  %vm209_vm3 = vcmp.eq.s32.totalorder %v1678_v39, 2  ;;  %vm211_vm4 = vcmp.eq.s32.totalorder %v1678_v39, 1  ;;  %1371 = vset.pattern.permute.xlu0 %v1510_v56 }
  0x4f   :  { %1298 = vmatprep.subr.bf16.mxu0 %v1297_v9  ;;  %v82_v20 = vld [vmem:[#allocation5] sm:$0xff]  ;;  %v1303_v23 = vpack.c.bf16 %v94_v17, %v92_v16  ;;  %v1305_v24 = vpack.c.bf16 %v99_v19, %v97_v18  ;;  %v96_v25 = vld [vmem:[#allocation7 + $0x60] sm:$0xff]  ;;  %v83_v29 = vld [vmem:[#allocation5 + $0x8] sm:$0xff]  ;;  %vm213_vm5 = vcmp.eq.s32.totalorder %v1678_v39, 3  ;;  %s1514_s13 = smov 48   ;;  %s1515_s14 = smov 47  }
  0x50   :  { %v1272_v21 = vld [vmem:[%s2023_s3] ss:$0 sm:$0xff]  ;;  %v426_v6 = vld [vmem:[#allocation2 + $0x10] sm:$0xff]  ;;  %v427_v7 = vld [vmem:[#allocation2 + $0x18] sm:$0xff]  ;;  %s1516_s15 = smov 46   ;;  %s1517_s17 = smov 45  }
  0x51   :  { %v197_v22 = vmul.f32 %v1272_v21, %v82_v20  ;;  %v98_v26 = vld [vmem:[#allocation7 + $0x70] sm:$0xff]  ;;  %v198_v30 = vmul.f32 %v1272_v21, %v83_v29  ;;  %v1711_v21 = vshrl.u32 %v205_v38, 7  ;;  %s1518_s18 = smov 35   ;;  %s1519_s0 = smov 34   ;;  %vm470_vm13 = vcmp.lt.s32.totalorder %v1678_v39, 51 }
  0x52   :  { %1300 = vmatpush1.bf16.msra.mxu0 %v1299_v14  ;;  %v1307_v28 = vpack.c.bf16 %v98_v26, %v96_v25  ;;  %v215_v47 = vld [vmem:[%s2025_s5] sm:$0x3]  ;;  %s1508_s5 = smov 126   ;;  %s1520_s16 = smov 33   ;;  %vm484_vm14 = vcmp.lt.s32.totalorder %v1678_v39, 50  ;;  %vm499_vm15 = vcmp.lt.s32.totalorder %v1678_v39, 49 }
  0x53   :  { %1302 = vmatprep.subr.bf16.mxu0 %v1301_v15  ;;  %v199_v27 = vsel %vm100_vm0, %v197_v22, 0.0  ;;  %v202_v31 = vsel %vm100_vm0, %v198_v30, 0.0  ;;  %v291_v52 = vld [vmem:[%s2026_s6] sm:$0xff]  ;;  %vm392_vm9 = vcmp.eq.s32.totalorder %v1711_v21, 0  ;;  %vm410_vm10 = vcmp.eq.s32.totalorder %v1711_v21, 2  ;;  %s1511_s6 = smov 51  }
  0x54   :  { %200 = vadd.xlane.f32.xlu0 %v199_v27  ;;  %203 = vadd.xlane.f32.xlu1 %v202_v31  ;;  %v383_v63 = vld [vmem:[#allocation2] sm:$0xff]  ;;  %vm434_vm11 = vcmp.eq.s32.totalorder %v1711_v21, 1  ;;  %vm451_vm12 = vcmp.eq.s32.totalorder %v1711_v21, 3  ;;  %s1521_s19 = smov 32   ;;  %s1522_s20 = smov 31  }
  0x55   :  { %s1523_s21 = smov 30   ;;  %s1524_s22 = smov 29  }
  0x56   :  { %1304 = vmatpush1.bf16.msra.mxu0 %v1303_v23  ;;  %s1525_s23 = smov 19   ;;  %s1526_s24 = smov 18  }
  0x57   :  { %1306 = vmatprep.subr.bf16.mxu0 %v1305_v24  ;;  %s1527_s26 = smov 17   ;;  %s1528_s27 = smov 15  }
  0x58   :  { %s1529_s28 = smov 14   ;;  %s1530_s2 = smov 13  }
  0x59   :  { %s1531_s29 = smov 3   ;;  %s1532_s4 = smov 2  }
  0x5a   :  { %1308 = vmatpush1.bf16.msra.mxu0 %v1307_v28  ;;  %s1533_s11 = smov 1   ;;  %s1534_s3 = smov 127  }
  0x5b   :  { %s1535_s12 = smov 125   ;;  %s1536_s30 = smov 115  }
  0x5c   :  { %s1537_s8 = smov 114  }
  0x5d   :  { %1270 = vmatmul.mubr.msk.f32.vlgmr.msra.gmra.mrb[0].mxu0 %vm100_vm0, %v82_v20 }
  0x5e   :  { %177 = vmatprep.mubr.f32.mxu0 %v1506_v0 }
  0x61   :  { %1271 = vmatmul.mubr.msk.f32.gmra.mrb[2].mxu0 %vm100_vm0, %v83_v29  ;;  %vm514_vm0 = vcmp.lt.s32.totalorder %v1678_v39, 48 }
  0xe1   :  { %v201_v40 = vpop.xlane.xlu0 %200  ;;  %v204_v42 = vpop.xlane.xlu1 %203 }
  0xe2   :  { %v208_v41 = vsel %vm207_vm2, %v201_v40, 0.0  ;;  %vm544_vm2 = vcmp.lt.s32.totalorder %v1678_v39, 46 }
 0x130   :  { %v173_v32 = vpop.f32.mrb[0].mxu0 }
 0x131   :  { %v175_v33 = vpop.f32.mrb[1].mxu0 }
 0x132   :  { %v184_v34 = vmax.f32 %v173_v32, %v175_v33 }
 0x134   :  { %185 = vmax.xlane.f32.xlu0 %v184_v34  ;;  %v179_v35 = vpop.f32.mrb[2].mxu0 }
 0x135   :  { %v181_v36 = vpop.f32.mrb[3].mxu0 }
 0x136   :  { %v187_v37 = vmax.f32 %v179_v35, %v181_v36 }
 0x138   :  { %188 = vmax.xlane.f32.xlu1 %v187_v37 }
 0x1c1   :  { %v186_v43 = vpop.xlane.xlu0 %185 }
 0x1c2   :  { %v210_v44 = vsel %vm209_vm3, %v186_v43, %v208_v41  ;;  %vm559_vm3 = vcmp.lt.s32.totalorder %v1678_v39, 45 }
 0x1c3   :  { %v212_v46 = vsel %vm211_vm4, %v204_v42, %v210_v44  ;;  %vm574_vm4 = vcmp.lt.s32.totalorder %v1678_v39, 35 }
 0x1c5   :  { %v189_v45 = vpop.xlane.xlu1 %188 }
 0x1c6   :  { %v214_v48 = vsel %vm213_vm5, %v189_v45, %v212_v46  ;;  %vm589_vm5 = vcmp.lt.s32.totalorder %v1678_v39, 34 }
 0x1c7   :  { %1284 = vmatpush3.msra.mxu1 %v214_v48 }
 0x1c8   :  { %1286 = vmatmul.mubr.msk.f32.vlgmr.msra.gmra.mrb[0].mxu1 %vm216_vm6, %v215_v47  ;;  %1288 = vmatprep.subr.mxu1 %v1506_v0  ;;  %vm604_vm6 = vcmp.lt.s32.totalorder %v1678_v39, 33 }
 0x1c9   :  { %1290 = vmatprep.mubr.msk.f32.mxu1 %vm1507_vm1, %v1506_v0  ;;  %v384_v0 = vld [vmem:[#allocation2 + $0x8] sm:$0xff]  ;;  %vm529_vm1 = vcmp.lt.s32.totalorder %v1678_v39, 47 }
 0x29b   :  { %v286_v49 = vpop.f32.mrb[0].mxu1 }
 0x29c   :  { %v290_v50 = vmax.f32 %v286_v49, 0.0  ;;  %v1287_v51 = vpop.f32.mrb[1].mxu1 }
 0x29e   :  { %1289 = vmatpush3.msk.msra.mxu1 %vm296_vm7, %v290_v50  ;;  %vm619_vm7 = vcmp.lt.s32.totalorder %v1678_v39, 32 }
 0x29f   :  { %1291 = vmatmul.mubr.msk.f32.vlgmr.msra.gmra.mrb[2].mxu1 %vm292_vm8, %v291_v52  ;;  %vm634_vm8 = vcmp.lt.s32.totalorder %v1678_v39, 31 }
 0x372   :  { %v366_v53 = vpop.f32.mrb[2].mxu1 }
 0x373   :  { %371 = vrot.lane.b32.xlu0 %v366_v53, %s1508_s5  ;;  %v1292_v54 = vpop.f32.mrb[3].mxu1 }
 0x3e5   :  { %v372_v57 = vpop.permute.xlu0 %371 }
 0x3e6   :  { %v374_v58 = vadd.f32 %v372_v57, %v366_v53 }
 0x3e8   :  { %v1276_v59 = vmul.f32 -1.442695, %v374_v58 }
 0x3ea   :  { %1372 = vpow2.f32 %v1276_v59 }
 0x3f4   :  { %v1373_v60 = vpop.eup %1372 }
 0x3f5   :  { %v378_v61 = vadd.f32 1.0, %v1373_v60 }
 0x3f7   :  { %1374 = vrcp.f32 %v378_v61 }
 0x401   :  { %v1375_v62 = vpop.eup %1374 }
 0x402   :  { %387 = vperm.xlu1 %1369, %v1375_v62  }
 0x406   :  { %1370 = vset.pattern.permute.xlu1 %v1510_v56 }
 0x407   :  { %429 = vperm.xlu1 %1370, %v1375_v62  }
 0x481   :  { %v388_v1 = vpop.permute.xlu1 %387 }
 0x482   :  { %v1694_v2 = vmul.f32 %v388_v1, %v383_v63  ;;  %v1696_v3 = vmul.f32 %v388_v1, %v384_v0 }
 0x484   :  { %v393_v4 = vrot.slane %v1694_v2, 4  ;;  %v399_v5 = vrot.slane %v1696_v3, 4 }
 0x486   :  { %v394_v8 = vadd.f32 %v393_v4, %v1694_v2  ;;  %v400_v9 = vadd.f32 %v399_v5, %v1696_v3  ;;  %v412_v10 = vmax.f32 %v1694_v2, %v393_v4  ;;  %v418_v11 = vmax.f32 %v1696_v3, %v399_v5  ;;  %v430_v12 = vpop.permute.xlu1 %429 }
 0x487   :  { %v1704_v13 = vmul.f32 %v430_v12, %v426_v6  ;;  %v1706_v14 = vmul.f32 %v430_v12, %v427_v7 }
 0x488   :  { %v395_v15 = vrot.slane %v394_v8, 2  ;;  %v401_v16 = vrot.slane %v400_v9, 2  ;;  %v413_v17 = vrot.slane %v412_v10, 2  ;;  %v419_v18 = vrot.slane %v418_v11, 2 }
 0x489   :  { %v435_v19 = vrot.slane %v1704_v13, 4  ;;  %v441_v20 = vrot.slane %v1706_v14, 4 }
 0x48a   :  { %v396_v22 = vadd.f32 %v395_v15, %v394_v8  ;;  %v402_v23 = vadd.f32 %v401_v16, %v400_v9  ;;  %v414_v30 = vmax.f32 %v412_v10, %v413_v17  ;;  %v420_v31 = vmax.f32 %v418_v11, %v419_v18 }
 0x48b   :  { %v436_v24 = vadd.f32 %v435_v19, %v1704_v13  ;;  %v442_v25 = vadd.f32 %v441_v20, %v1706_v14  ;;  %v453_v26 = vmax.f32 %v1704_v13, %v435_v19  ;;  %v459_v27 = vmax.f32 %v1706_v14, %v441_v20  ;;  %v473_v19 = vld [vmem:[#allocation8] sm:$0xff]  ;;  %v503_v20 = vld [vmem:[#allocation8 + $0x10] sm:$0xff] }
 0x48c   :  { %v397_v28 = vrot.slane %v396_v22, 1  ;;  %v403_v29 = vrot.slane %v402_v23, 1  ;;  %v415_v45 = vrot.slane %v414_v30, 1  ;;  %v421_v46 = vrot.slane %v420_v31, 1 }
 0x48d   :  { %v437_v32 = vrot.slane %v436_v24, 2  ;;  %v443_v33 = vrot.slane %v442_v25, 2  ;;  %v454_v34 = vrot.slane %v453_v26, 2  ;;  %v460_v35 = vrot.slane %v459_v27, 2 }
 0x48e   :  { %v398_v36 = vadd.f32 %v397_v28, %v396_v22  ;;  %v404_v37 = vadd.f32 %v403_v29, %v402_v23  ;;  %v416_v55 = vmax.f32 %v414_v30, %v415_v45  ;;  %v422_v56 = vmax.f32 %v420_v31, %v421_v46  ;;  %v488_v29 = vld [vmem:[#allocation8 + $0x8] sm:$0xff]  ;;  %v518_v30 = vld [vmem:[#allocation8 + $0x18] sm:$0xff] }
 0x48f   :  { %v438_v38 = vadd.f32 %v437_v32, %v436_v24  ;;  %v444_v40 = vadd.f32 %v443_v33, %v442_v25  ;;  %v455_v41 = vmax.f32 %v453_v26, %v454_v34  ;;  %v461_v42 = vmax.f32 %v459_v27, %v460_v35 }
 0x490   :  { %v406_v43 = vmul.f32 0.125, %v398_v36  ;;  %v407_v44 = vmul.f32 0.125, %v404_v37 }
 0x491   :  { %v439_v47 = vrot.slane %v438_v38, 1  ;;  %v445_v48 = vrot.slane %v444_v40, 1  ;;  %v456_v49 = vrot.slane %v455_v41, 1  ;;  %v462_v50 = vrot.slane %v461_v42, 1 }
 0x492   :  { %v408_v51 = vsel %vm392_vm9, %v406_v43, 0.0  ;;  %v409_v52 = vsel %vm392_vm9, %v407_v44, 0.0  ;;  %vm649_vm9 = vcmp.lt.s32.totalorder %v1678_v39, 30 }
 0x493   :  { %v440_v53 = vadd.f32 %v439_v47, %v438_v38  ;;  %v446_v54 = vadd.f32 %v445_v48, %v444_v40  ;;  %v423_v59 = vsel %vm410_vm10, %v416_v55, %v408_v51  ;;  %v424_v60 = vsel %vm410_vm10, %v422_v56, %v409_v52  ;;  %v533_v40 = vld [vmem:[#allocation8 + $0x20] sm:$0xff]  ;;  %v548_v48 = vld [vmem:[#allocation8 + $0x28] sm:$0xff]  ;;  %v563_v56 = vld [vmem:[#allocation8 + $0x30] sm:$0xff] }
 0x494   :  { %v457_v61 = vmax.f32 %v455_v41, %v456_v49  ;;  %v463_v62 = vmax.f32 %v461_v42, %v462_v50  ;;  %vm664_vm10 = vcmp.lt.s32.totalorder %v1678_v39, 29 }
 0x495   :  { %v447_v57 = vmul.f32 0.125, %v440_v53  ;;  %v448_v58 = vmul.f32 0.125, %v446_v54 }
 0x497   :  { %v449_v63 = vsel %vm434_vm11, %v447_v57, %v423_v59  ;;  %v450_v0 = vsel %vm434_vm11, %v448_v58, %v424_v60  ;;  %vm679_vm11 = vcmp.lt.s32.totalorder %v1678_v39, 19 }
 0x498   :  { %v1725_v1 = vsel %vm451_vm12, %v457_v61, %v449_v63  ;;  %v1727_v4 = vsel %vm451_vm12, %v463_v62, %v450_v0  ;;  %v578_v0 = vld [vmem:[#allocation8 + $0x38] sm:$0xff]  ;;  %vm694_vm12 = vcmp.lt.s32.totalorder %v1678_v39, 18 }
 0x499   :  { %468 = vrot.lane.b32.xlu0 %v1727_v4, %s1511_s6  ;;  %466 = vrot.lane.b32.xlu1 %v1725_v1, %s1511_s6  ;;  %s1539_s6 = smov 112  }
 0x49d   :  { %482 = vrot.lane.b32.xlu0 %v1727_v4, %s1512_s9  ;;  %480 = vrot.lane.b32.xlu1 %v1725_v1, %s1512_s9  ;;  %s1540_s9 = smov 111  }
 0x4a1   :  { %497 = vrot.lane.b32.xlu0 %v1727_v4, %s1513_s10  ;;  %495 = vrot.lane.b32.xlu1 %v1725_v1, %s1513_s10  ;;  %s1541_s10 = smov 110  }
 0x4a5   :  { %512 = vrot.lane.b32.xlu0 %v1727_v4, %s1514_s13  ;;  %510 = vrot.lane.b32.xlu1 %v1725_v1, %s1514_s13  ;;  %s1542_s13 = smov 109  }
 0x4a9   :  { %527 = vrot.lane.b32.xlu0 %v1727_v4, %s1515_s14  ;;  %525 = vrot.lane.b32.xlu1 %v1725_v1, %s1515_s14  ;;  %s1543_s14 = smov 99  }
 0x4ad   :  { %542 = vrot.lane.b32.xlu0 %v1727_v4, %s1516_s15  ;;  %540 = vrot.lane.b32.xlu1 %v1725_v1, %s1516_s15  ;;  %s1544_s15 = smov 98  }
 0x4b1   :  { %557 = vrot.lane.b32.xlu0 %v1727_v4, %s1517_s17  ;;  %555 = vrot.lane.b32.xlu1 %v1725_v1, %s1517_s17  ;;  %s1545_s17 = smov 97  }
 0x4b5   :  { %572 = vrot.lane.b32.xlu0 %v1727_v4, %s1518_s18  ;;  %570 = vrot.lane.b32.xlu1 %v1725_v1, %s1518_s18  ;;  %s1546_s18 = smov 96  }
 0x4b9   :  { %587 = vrot.lane.b32.xlu0 %v1727_v4, %s1519_s0  ;;  %585 = vrot.lane.b32.xlu1 %v1725_v1, %s1519_s0  ;;  %s1547_s0 = smov 95  }
 0x4bd   :  { %602 = vrot.lane.b32.xlu0 %v1727_v4, %s1520_s16  ;;  %600 = vrot.lane.b32.xlu1 %v1725_v1, %s1520_s16  ;;  %s1548_s16 = smov 94  }
 0x4c1   :  { %617 = vrot.lane.b32.xlu0 %v1727_v4, %s1521_s19  ;;  %615 = vrot.lane.b32.xlu1 %v1725_v1, %s1521_s19  ;;  %s1549_s19 = smov 93  }
 0x4c5   :  { %632 = vrot.lane.b32.xlu0 %v1727_v4, %s1522_s20  ;;  %630 = vrot.lane.b32.xlu1 %v1725_v1, %s1522_s20  ;;  %s1550_s20 = smov 83  }
 0x4c9   :  { %647 = vrot.lane.b32.xlu0 %v1727_v4, %s1523_s21  ;;  %645 = vrot.lane.b32.xlu1 %v1725_v1, %s1523_s21  ;;  %s1551_s21 = smov 82  }
 0x4cd   :  { %662 = vrot.lane.b32.xlu0 %v1727_v4, %s1524_s22  ;;  %660 = vrot.lane.b32.xlu1 %v1725_v1, %s1524_s22  ;;  %s1552_s22 = smov 81  }
 0x4d1   :  { %677 = vrot.lane.b32.xlu0 %v1727_v4, %s1525_s23  ;;  %675 = vrot.lane.b32.xlu1 %v1725_v1, %s1525_s23  ;;  %s1553_s23 = smov 80  }
 0x4d5   :  { %692 = vrot.lane.b32.xlu0 %v1727_v4, %s1526_s24  ;;  %690 = vrot.lane.b32.xlu1 %v1725_v1, %s1526_s24  ;;  %s1554_s24 = smov 79  }
 0x4d9   :  { %707 = vrot.lane.b32.xlu0 %v1727_v4, %s1527_s26  ;;  %705 = vrot.lane.b32.xlu1 %v1725_v1, %s1527_s26  ;;  %s1555_s26 = smov 78  }
 0x4dd   :  { %722 = vrot.lane.b32.xlu0 %v1727_v4, %s1503_s25  ;;  %720 = vrot.lane.b32.xlu1 %v1725_v1, %s1503_s25 }
 0x4e1   :  { %737 = vrot.lane.b32.xlu0 %v1727_v4, %s1528_s27  ;;  %735 = vrot.lane.b32.xlu1 %v1725_v1, %s1528_s27  ;;  %s1556_s27 = smov 77  }
 0x4e5   :  { %752 = vrot.lane.b32.xlu0 %v1727_v4, %s1529_s28  ;;  %750 = vrot.lane.b32.xlu1 %v1725_v1, %s1529_s28  ;;  %s1557_s28 = smov [#allocation10]  }
 0x4e9   :  { %767 = vrot.lane.b32.xlu0 %v1727_v4, %s1530_s2  ;;  %765 = vrot.lane.b32.xlu1 %v1725_v1, %s1530_s2  ;;  %s1256_s2 = sshll.u32 %s1557_s28, 4  ;;  %s1257_s2 = int_to_ptr.vmem [resolvable:$true] %s1256_s2 }
 0x4ea   :  { %p1473_p5 = scmp.lt.s32.totalorder %s1257_s2, %s1257_s2 }
 0x4ed   :  { %782 = vrot.lane.b32.xlu0 %v1727_v4, %s1531_s29  ;;  %780 = vrot.lane.b32.xlu1 %v1725_v1, %s1531_s29  ;;  %s1468_s29 = scalar_lea.vmem %s1257_s2, 512 }
 0x4ee   :  { %p1469_p4 = scmp.ne.s32.totalorder %s1257_s2, %s1468_s29  ;;  %p1474_p6 = scmp.lt.s32.totalorder %s1468_s29, %s1468_s29 }
 0x4f0   :  { %p1475_p7 = por %p1474_p6, %p1473_p5 }
 0x4f1   :  { %797 = vrot.lane.b32.xlu0 %v1727_v4, %s1532_s4  ;;  %795 = vrot.lane.b32.xlu1 %v1725_v1, %s1532_s4 }
 0x4f2   :  { %p1476_p8 = pnand %p1475_p7, %p1469_p4 }
 0x4f5   :  { %812 = vrot.lane.b32.xlu0 %v1727_v4, %s1533_s11  ;;  %810 = vrot.lane.b32.xlu1 %v1725_v1, %s1533_s11 }
 0x4f9   :  { %835 = vrot.lane.b32.xlu0 %v1727_v4, %s1534_s3  ;;  %833 = vrot.lane.b32.xlu1 %v1725_v1, %s1534_s3 }
 0x4fd   :  { %850 = vrot.lane.b32.xlu0 %v1727_v4, %s1508_s5  ;;  %848 = vrot.lane.b32.xlu1 %v1725_v1, %s1508_s5  ;;  %s1538_s5 = smov 113  }
 0x501   :  { %865 = vrot.lane.b32.xlu0 %v1727_v4, %s1535_s12  ;;  %863 = vrot.lane.b32.xlu1 %v1725_v1, %s1535_s12 }
 0x505   :  { %880 = vrot.lane.b32.xlu0 %v1727_v4, %s1536_s30  ;;  %878 = vrot.lane.b32.xlu1 %v1725_v1, %s1536_s30 }
 0x509   :  { %895 = vrot.lane.b32.xlu0 %v1727_v4, %s1537_s8  ;;  %893 = vrot.lane.b32.xlu1 %v1725_v1, %s1537_s8 }
 0x50b   :  { %v469_v5 = vpop.permute.xlu0 %468  ;;  %v467_v6 = vpop.permute.xlu1 %466 }
 0x50c   :  { %v471_v7 = vsel %vm470_vm13, %v467_v6, %v469_v5  ;;  %v472_v8 = vsel %vm470_vm13, %v469_v5, %v467_v6  ;;  %vm709_vm13 = vcmp.lt.s32.totalorder %v1678_v39, 17 }
 0x50d   :  { %v476_v9 = vcombine.low %v472_v8, %v471_v7  ;;  %910 = vrot.lane.b32.xlu0 %v1727_v4, %s1538_s5  ;;  %908 = vrot.lane.b32.xlu1 %v1725_v1, %s1538_s5 }
 0x50f   :  { %v483_v10 = vpop.permute.xlu0 %482  ;;  %v481_v11 = vpop.permute.xlu1 %480  ;;  %v478_v25 = vmul.f32 %v476_v9, %v473_v19 }
 0x510   :  { %v485_v12 = vsel %vm484_vm14, %v481_v11, %v483_v10  ;;  %v486_v15 = vsel %vm484_vm14, %v483_v10, %v481_v11  ;;  %vm724_vm14 = vcmp.lt.s32.totalorder %v1678_v39, 16 }
 0x511   :  { %v491_v16 = vcombine.low %v486_v15, %v485_v12  ;;  %925 = vrot.lane.b32.xlu0 %v1727_v4, %s1539_s6  ;;  %923 = vrot.lane.b32.xlu1 %v1725_v1, %s1539_s6  ;;  %v593_v12 = vld [vmem:[#allocation8 + $0x40] sm:$0xff] }
 0x513   :  { %v498_v17 = vpop.permute.xlu0 %497  ;;  %v496_v18 = vpop.permute.xlu1 %495  ;;  %v493_v35 = vmul.f32 %v491_v16, %v488_v29 }
 0x514   :  { %v500_v22 = vsel %vm499_vm15, %v496_v18, %v498_v17  ;;  %v501_v23 = vsel %vm499_vm15, %v498_v17, %v496_v18  ;;  %vm739_vm15 = vcmp.lt.s32.totalorder %v1678_v39, 15 }
 0x515   :  { %v506_v24 = vcombine.low %v501_v23, %v500_v22  ;;  %940 = vrot.lane.b32.xlu0 %v1727_v4, %s1540_s9  ;;  %938 = vrot.lane.b32.xlu1 %v1725_v1, %s1540_s9  ;;  %v608_v23 = vld [vmem:[#allocation8 + $0x48] sm:$0xff] }
 0x517   :  { %v508_v26 = vmul.f32 %v506_v24, %v503_v20  ;;  %v513_v27 = vpop.permute.xlu0 %512  ;;  %v511_v28 = vpop.permute.xlu1 %510 }
 0x518   :  { %v515_v31 = vsel %vm514_vm0, %v511_v28, %v513_v27  ;;  %v516_v32 = vsel %vm514_vm0, %v513_v27, %v511_v28  ;;  %vm754_vm0 = vcmp.lt.s32.totalorder %v1678_v39, 14 }
 0x519   :  { %v509_v33 = vadd.f32 %v508_v26, %v478_v25  ;;  %v521_v34 = vcombine.low %v516_v32, %v515_v31  ;;  %955 = vrot.lane.b32.xlu0 %v1727_v4, %s1541_s10  ;;  %953 = vrot.lane.b32.xlu1 %v1725_v1, %s1541_s10  ;;  %v623_v31 = vld [vmem:[#allocation8 + $0x50] sm:$0xff] }
 0x51b   :  { %v523_v36 = vmul.f32 %v521_v34, %v518_v30  ;;  %v528_v37 = vpop.permute.xlu0 %527  ;;  %v526_v38 = vpop.permute.xlu1 %525 }
 0x51c   :  { %v530_v41 = vsel %vm529_vm1, %v526_v38, %v528_v37  ;;  %v531_v42 = vsel %vm529_vm1, %v528_v37, %v526_v38  ;;  %vm769_vm1 = vcmp.lt.s32.totalorder %v1678_v39, 13 }
 0x51d   :  { %v524_v43 = vadd.f32 %v523_v36, %v493_v35  ;;  %v536_v44 = vcombine.low %v531_v42, %v530_v41  ;;  %970 = vrot.lane.b32.xlu0 %v1727_v4, %s1542_s13  ;;  %968 = vrot.lane.b32.xlu1 %v1725_v1, %s1542_s13 }
 0x51f   :  { %v538_v45 = vmul.f32 %v536_v44, %v533_v40  ;;  %v543_v46 = vpop.permute.xlu0 %542  ;;  %v541_v47 = vpop.permute.xlu1 %540  ;;  %v638_v40 = vld [vmem:[#allocation8 + $0x58] sm:$0xff] }
 0x520   :  { %v545_v49 = vsel %vm544_vm2, %v541_v47, %v543_v46  ;;  %v546_v50 = vsel %vm544_vm2, %v543_v46, %v541_v47  ;;  %vm784_vm2 = vcmp.lt.s32.totalorder %v1678_v39, 3 }
 0x521   :  { %v539_v51 = vadd.f32 %v538_v45, %v509_v33  ;;  %v551_v52 = vcombine.low %v546_v50, %v545_v49  ;;  %985 = vrot.lane.b32.xlu0 %v1727_v4, %s1543_s14  ;;  %983 = vrot.lane.b32.xlu1 %v1725_v1, %s1543_s14 }
 0x523   :  { %v553_v53 = vmul.f32 %v551_v52, %v548_v48  ;;  %v558_v54 = vpop.permute.xlu0 %557  ;;  %v556_v55 = vpop.permute.xlu1 %555  ;;  %v653_v48 = vld [vmem:[#allocation8 + $0x60] sm:$0xff] }
 0x524   :  { %v560_v57 = vsel %vm559_vm3, %v556_v55, %v558_v54  ;;  %v561_v58 = vsel %vm559_vm3, %v558_v54, %v556_v55  ;;  %vm799_vm3 = vcmp.lt.s32.totalorder %v1678_v39, 2 }
 0x525   :  { %v554_v59 = vadd.f32 %v553_v53, %v524_v43  ;;  %v566_v60 = vcombine.low %v561_v58, %v560_v57  ;;  %1000 = vrot.lane.b32.xlu0 %v1727_v4, %s1544_s15  ;;  %998 = vrot.lane.b32.xlu1 %v1725_v1, %s1544_s15 }
 0x527   :  { %v568_v61 = vmul.f32 %v566_v60, %v563_v56  ;;  %v573_v62 = vpop.permute.xlu0 %572  ;;  %v571_v63 = vpop.permute.xlu1 %570  ;;  %v668_v56 = vld [vmem:[#allocation8 + $0x68] sm:$0xff] }
 0x528   :  { %v575_v5 = vsel %vm574_vm4, %v571_v63, %v573_v62  ;;  %v576_v6 = vsel %vm574_vm4, %v573_v62, %v571_v63  ;;  %vm814_vm4 = vcmp.lt.s32.totalorder %v1678_v39, 1 }
 0x529   :  { %v569_v7 = vadd.f32 %v568_v61, %v539_v51  ;;  %v581_v8 = vcombine.low %v576_v6, %v575_v5  ;;  %1015 = vrot.lane.b32.xlu0 %v1727_v4, %s1545_s17  ;;  %1013 = vrot.lane.b32.xlu1 %v1725_v1, %s1545_s17 }
 0x52b   :  { %v583_v9 = vmul.f32 %v581_v8, %v578_v0  ;;  %v588_v10 = vpop.permute.xlu0 %587  ;;  %v586_v11 = vpop.permute.xlu1 %585  ;;  %v683_v0 = vld [vmem:[#allocation8 + $0x70] sm:$0xff] }
 0x52c   :  { %v590_v15 = vsel %vm589_vm5, %v586_v11, %v588_v10  ;;  %v591_v16 = vsel %vm589_vm5, %v588_v10, %v586_v11  ;;  %vm837_vm5 = vcmp.lt.s32.totalorder %v1678_v39, 127 }
 0x52d   :  { %v584_v17 = vadd.f32 %v583_v9, %v554_v59  ;;  %v596_v18 = vcombine.low %v591_v16, %v590_v15  ;;  %1030 = vrot.lane.b32.xlu0 %v1727_v4, %s1546_s18  ;;  %1028 = vrot.lane.b32.xlu1 %v1725_v1, %s1546_s18 }
 0x52f   :  { %v598_v19 = vmul.f32 %v596_v18, %v593_v12  ;;  %v603_v20 = vpop.permute.xlu0 %602  ;;  %v601_v22 = vpop.permute.xlu1 %600  ;;  %v698_v12 = vld [vmem:[#allocation8 + $0x78] sm:$0xff] }
 0x530   :  { %v605_v24 = vsel %vm604_vm6, %v601_v22, %v603_v20  ;;  %v606_v25 = vsel %vm604_vm6, %v603_v20, %v601_v22  ;;  %vm852_vm6 = vcmp.lt.s32.totalorder %v1678_v39, 126 }
 0x531   :  { %v599_v26 = vadd.f32 %v598_v19, %v569_v7  ;;  %v611_v27 = vcombine.low %v606_v25, %v605_v24  ;;  %1045 = vrot.lane.b32.xlu0 %v1727_v4, %s1547_s0  ;;  %1043 = vrot.lane.b32.xlu1 %v1725_v1, %s1547_s0 }
 0x533   :  { %v613_v28 = vmul.f32 %v611_v27, %v608_v23  ;;  %v618_v29 = vpop.permute.xlu0 %617  ;;  %v616_v30 = vpop.permute.xlu1 %615  ;;  %v713_v23 = vld [vmem:[#allocation8 + $0x80] sm:$0xff] }
 0x534   :  { %v620_v32 = vsel %vm619_vm7, %v616_v30, %v618_v29  ;;  %v621_v33 = vsel %vm619_vm7, %v618_v29, %v616_v30  ;;  %vm867_vm7 = vcmp.lt.s32.totalorder %v1678_v39, 125 }
 0x535   :  { %v614_v34 = vadd.f32 %v613_v28, %v584_v17  ;;  %v626_v35 = vcombine.low %v621_v33, %v620_v32  ;;  %1060 = vrot.lane.b32.xlu0 %v1727_v4, %s1548_s16  ;;  %1058 = vrot.lane.b32.xlu1 %v1725_v1, %s1548_s16 }
 0x537   :  { %v628_v36 = vmul.f32 %v626_v35, %v623_v31  ;;  %v633_v37 = vpop.permute.xlu0 %632  ;;  %v631_v38 = vpop.permute.xlu1 %630  ;;  %v728_v31 = vld [vmem:[#allocation8 + $0x88] sm:$0xff] }
 0x538   :  { %v635_v41 = vsel %vm634_vm8, %v631_v38, %v633_v37  ;;  %v636_v42 = vsel %vm634_vm8, %v633_v37, %v631_v38  ;;  %vm882_vm8 = vcmp.lt.s32.totalorder %v1678_v39, 115 }
 0x539   :  { %v629_v43 = vadd.f32 %v628_v36, %v599_v26  ;;  %v641_v44 = vcombine.low %v636_v42, %v635_v41  ;;  %1075 = vrot.lane.b32.xlu0 %v1727_v4, %s1549_s19  ;;  %1073 = vrot.lane.b32.xlu1 %v1725_v1, %s1549_s19 }
 0x53b   :  { %v643_v45 = vmul.f32 %v641_v44, %v638_v40  ;;  %v648_v46 = vpop.permute.xlu0 %647  ;;  %v646_v47 = vpop.permute.xlu1 %645  ;;  %v743_v40 = vld [vmem:[#allocation8 + $0x90] sm:$0xff] }
 0x53c   :  { %v650_v49 = vsel %vm649_vm9, %v646_v47, %v648_v46  ;;  %v651_v50 = vsel %vm649_vm9, %v648_v46, %v646_v47  ;;  %vm897_vm9 = vcmp.lt.s32.totalorder %v1678_v39, 114 }
 0x53d   :  { %v644_v51 = vadd.f32 %v643_v45, %v614_v34  ;;  %v656_v52 = vcombine.low %v651_v50, %v650_v49  ;;  %1090 = vrot.lane.b32.xlu0 %v1727_v4, %s1550_s20  ;;  %1088 = vrot.lane.b32.xlu1 %v1725_v1, %s1550_s20 }
 0x53f   :  { %v658_v53 = vmul.f32 %v656_v52, %v653_v48  ;;  %v663_v54 = vpop.permute.xlu0 %662  ;;  %v661_v55 = vpop.permute.xlu1 %660  ;;  %v758_v48 = vld [vmem:[#allocation8 + $0x98] sm:$0xff] }
 0x540   :  { %v665_v57 = vsel %vm664_vm10, %v661_v55, %v663_v54  ;;  %v666_v58 = vsel %vm664_vm10, %v663_v54, %v661_v55  ;;  %vm912_vm10 = vcmp.lt.s32.totalorder %v1678_v39, 113 }
 0x541   :  { %v659_v59 = vadd.f32 %v658_v53, %v629_v43  ;;  %v671_v60 = vcombine.low %v666_v58, %v665_v57  ;;  %1105 = vrot.lane.b32.xlu0 %v1727_v4, %s1551_s21  ;;  %1103 = vrot.lane.b32.xlu1 %v1725_v1, %s1551_s21 }
 0x543   :  { %v673_v61 = vmul.f32 %v671_v60, %v668_v56  ;;  %v678_v62 = vpop.permute.xlu0 %677  ;;  %v676_v63 = vpop.permute.xlu1 %675  ;;  %v773_v56 = vld [vmem:[#allocation8 + $0xa0] sm:$0xff] }
 0x544   :  { %v680_v5 = vsel %vm679_vm11, %v676_v63, %v678_v62  ;;  %v681_v6 = vsel %vm679_vm11, %v678_v62, %v676_v63  ;;  %vm927_vm11 = vcmp.lt.s32.totalorder %v1678_v39, 112 }
 0x545   :  { %v674_v7 = vadd.f32 %v673_v61, %v644_v51  ;;  %v686_v8 = vcombine.low %v681_v6, %v680_v5  ;;  %1120 = vrot.lane.b32.xlu0 %v1727_v4, %s1552_s22  ;;  %1118 = vrot.lane.b32.xlu1 %v1725_v1, %s1552_s22 }
 0x547   :  { %v688_v9 = vmul.f32 %v686_v8, %v683_v0  ;;  %v693_v10 = vpop.permute.xlu0 %692  ;;  %v691_v11 = vpop.permute.xlu1 %690  ;;  %v788_v0 = vld [vmem:[#allocation8 + $0xa8] sm:$0xff] }
 0x548   :  { %v695_v15 = vsel %vm694_vm12, %v691_v11, %v693_v10  ;;  %v696_v16 = vsel %vm694_vm12, %v693_v10, %v691_v11  ;;  %vm942_vm12 = vcmp.lt.s32.totalorder %v1678_v39, 111 }
 0x549   :  { %v689_v17 = vadd.f32 %v688_v9, %v659_v59  ;;  %v701_v18 = vcombine.low %v696_v16, %v695_v15  ;;  %1135 = vrot.lane.b32.xlu0 %v1727_v4, %s1553_s23  ;;  %1133 = vrot.lane.b32.xlu1 %v1725_v1, %s1553_s23 }
 0x54b   :  { %v703_v19 = vmul.f32 %v701_v18, %v698_v12  ;;  %v708_v20 = vpop.permute.xlu0 %707  ;;  %v706_v22 = vpop.permute.xlu1 %705  ;;  %v803_v12 = vld [vmem:[#allocation8 + $0xb0] sm:$0xff] }
 0x54c   :  { %v710_v24 = vsel %vm709_vm13, %v706_v22, %v708_v20  ;;  %v711_v25 = vsel %vm709_vm13, %v708_v20, %v706_v22  ;;  %vm957_vm13 = vcmp.lt.s32.totalorder %v1678_v39, 110 }
 0x54d   :  { %v704_v26 = vadd.f32 %v703_v19, %v674_v7  ;;  %v716_v27 = vcombine.low %v711_v25, %v710_v24  ;;  %1150 = vrot.lane.b32.xlu0 %v1727_v4, %s1554_s24  ;;  %1148 = vrot.lane.b32.xlu1 %v1725_v1, %s1554_s24 }
 0x54f   :  { %v718_v28 = vmul.f32 %v716_v27, %v713_v23  ;;  %v723_v29 = vpop.permute.xlu0 %722  ;;  %v721_v30 = vpop.permute.xlu1 %720  ;;  %v818_v23 = vld [vmem:[#allocation8 + $0xb8] sm:$0xff] }
 0x550   :  { %v725_v32 = vsel %vm724_vm14, %v721_v30, %v723_v29  ;;  %v726_v33 = vsel %vm724_vm14, %v723_v29, %v721_v30  ;;  %vm972_vm14 = vcmp.lt.s32.totalorder %v1678_v39, 109 }
 0x551   :  { %v719_v34 = vadd.f32 %v718_v28, %v689_v17  ;;  %v731_v35 = vcombine.low %v726_v33, %v725_v32  ;;  %1165 = vrot.lane.b32.xlu0 %v1727_v4, %s1555_s26  ;;  %1163 = vrot.lane.b32.xlu1 %v1725_v1, %s1555_s26 }
 0x553   :  { %v733_v36 = vmul.f32 %v731_v35, %v728_v31  ;;  %v738_v37 = vpop.permute.xlu0 %737  ;;  %v736_v38 = vpop.permute.xlu1 %735  ;;  %v841_v31 = vld [vmem:[#allocation8 + $0xc8] sm:$0xff] }
 0x554   :  { %v740_v41 = vsel %vm739_vm15, %v736_v38, %v738_v37  ;;  %v741_v42 = vsel %vm739_vm15, %v738_v37, %v736_v38  ;;  %v826_v37 = vld [vmem:[#allocation8 + $0xc0] sm:$0xff]  ;;  %vm987_vm15 = vcmp.lt.s32.totalorder %v1678_v39, 99 }
 0x555   :  { %v734_v43 = vadd.f32 %v733_v36, %v704_v26  ;;  %v746_v44 = vcombine.low %v741_v42, %v740_v41  ;;  %1180 = vrot.lane.b32.xlu0 %v1727_v4, %s1556_s27  ;;  %1178 = vrot.lane.b32.xlu1 %v1725_v1, %s1556_s27  ;;  %v829_v36 = vcombine.low %v1725_v1, %v1727_v4  ;;  %v856_v42 = vld [vmem:[#allocation8 + $0xd0] sm:$0xff] }
 0x557   :  { %v748_v45 = vmul.f32 %v746_v44, %v743_v40  ;;  %v753_v46 = vpop.permute.xlu0 %752  ;;  %v751_v47 = vpop.permute.xlu1 %750 }
 0x558   :  { %v755_v49 = vsel %vm754_vm0, %v751_v47, %v753_v46  ;;  %v756_v50 = vsel %vm754_vm0, %v753_v46, %v751_v47  ;;  %v831_v46 = vmul.f32 %v829_v36, %v826_v37  ;;  %vm1002_vm0 = vcmp.lt.s32.totalorder %v1678_v39, 98 }
 0x559   :  { %v749_v51 = vadd.f32 %v748_v45, %v719_v34  ;;  %v761_v52 = vcombine.low %v756_v50, %v755_v49 }
 0x55b   :  { %v763_v53 = vmul.f32 %v761_v52, %v758_v48  ;;  %v768_v54 = vpop.permute.xlu0 %767  ;;  %v766_v55 = vpop.permute.xlu1 %765  ;;  %v871_v52 = vld [vmem:[#allocation8 + $0xd8] sm:$0xff] }
 0x55c   :  { %v770_v57 = vsel %vm769_vm1, %v766_v55, %v768_v54  ;;  %v771_v58 = vsel %vm769_vm1, %v768_v54, %v766_v55  ;;  %vm1017_vm1 = vcmp.lt.s32.totalorder %v1678_v39, 97 }
 0x55d   :  { %v764_v59 = vadd.f32 %v763_v53, %v734_v43  ;;  %v776_v60 = vcombine.low %v771_v58, %v770_v57 }
 0x55f   :  { %v778_v61 = vmul.f32 %v776_v60, %v773_v56  ;;  %v783_v62 = vpop.permute.xlu0 %782  ;;  %v781_v63 = vpop.permute.xlu1 %780 }
 0x560   :  { %v785_v5 = vsel %vm784_vm2, %v781_v63, %v783_v62  ;;  %v786_v6 = vsel %vm784_vm2, %v783_v62, %v781_v63  ;;  %vm1032_vm2 = vcmp.lt.s32.totalorder %v1678_v39, 96 }
 0x561   :  { %v779_v7 = vadd.f32 %v778_v61, %v749_v51  ;;  %v791_v8 = vcombine.low %v786_v6, %v785_v5 }
 0x563   :  { %v793_v9 = vmul.f32 %v791_v8, %v788_v0  ;;  %v798_v10 = vpop.permute.xlu0 %797  ;;  %v796_v11 = vpop.permute.xlu1 %795 }
 0x564   :  { %v800_v15 = vsel %vm799_vm3, %v796_v11, %v798_v10  ;;  %v801_v16 = vsel %vm799_vm3, %v798_v10, %v796_v11  ;;  %vm1047_vm3 = vcmp.lt.s32.totalorder %v1678_v39, 95 }
 0x565   :  { %v794_v17 = vadd.f32 %v793_v9, %v764_v59  ;;  %v806_v18 = vcombine.low %v801_v16, %v800_v15 }
 0x567   :  { %v808_v19 = vmul.f32 %v806_v18, %v803_v12  ;;  %v813_v20 = vpop.permute.xlu0 %812  ;;  %v811_v22 = vpop.permute.xlu1 %810 }
 0x568   :  { %v815_v24 = vsel %vm814_vm4, %v811_v22, %v813_v20  ;;  %v816_v25 = vsel %vm814_vm4, %v813_v20, %v811_v22  ;;  %vm1062_vm4 = vcmp.lt.s32.totalorder %v1678_v39, 94 }
 0x569   :  { %v809_v26 = vadd.f32 %v808_v19, %v779_v7  ;;  %v821_v27 = vcombine.low %v816_v25, %v815_v24 }
 0x56b   :  { %v823_v28 = vmul.f32 %v821_v27, %v818_v23  ;;  %v836_v29 = vpop.permute.xlu0 %835  ;;  %v834_v30 = vpop.permute.xlu1 %833  ;;  %v832_v48 = vadd.f32 %v831_v46, %v809_v26 }
 0x56c   :  { %v838_v32 = vsel %vm837_vm5, %v834_v30, %v836_v29  ;;  %v839_v33 = vsel %vm837_vm5, %v836_v29, %v834_v30  ;;  %vm1077_vm5 = vcmp.lt.s32.totalorder %v1678_v39, 93 }
 0x56d   :  { %v824_v34 = vadd.f32 %v823_v28, %v794_v17  ;;  %v844_v35 = vcombine.low %v838_v32, %v839_v33 }
 0x56f   :  { %v846_v38 = vmul.f32 %v844_v35, %v841_v31  ;;  %v851_v40 = vpop.permute.xlu0 %850  ;;  %v849_v41 = vpop.permute.xlu1 %848 }
 0x570   :  { %v853_v43 = vsel %vm852_vm6, %v849_v41, %v851_v40  ;;  %v854_v44 = vsel %vm852_vm6, %v851_v40, %v849_v41  ;;  %v901_v40 = vld [vmem:[#allocation8 + $0xe8] sm:$0xff]  ;;  %vm1092_vm6 = vcmp.lt.s32.totalorder %v1678_v39, 83 }
 0x571   :  { %v847_v45 = vadd.f32 %v846_v38, %v824_v34  ;;  %v859_v47 = vcombine.low %v853_v43, %v854_v44  ;;  %v886_v38 = vld [vmem:[#allocation8 + $0xe0] sm:$0xff] }
 0x573   :  { %v861_v49 = vmul.f32 %v859_v47, %v856_v42  ;;  %v866_v50 = vpop.permute.xlu0 %865  ;;  %v864_v51 = vpop.permute.xlu1 %863  ;;  %v916_v47 = vld [vmem:[#allocation8 + $0xf0] sm:$0xff] }
 0x574   :  { %v868_v53 = vsel %vm867_vm7, %v864_v51, %v866_v50  ;;  %v869_v54 = vsel %vm867_vm7, %v866_v50, %v864_v51  ;;  %vm1107_vm7 = vcmp.lt.s32.totalorder %v1678_v39, 82 }
 0x575   :  { %v1858_v1 = vadd.f32 %v861_v49, %v832_v48  ;;  %v874_v4 = vcombine.low %v868_v53, %v869_v54  ;;  %v931_v54 = vld [vmem:[#allocation8 + $0xf8] sm:$0xff] }
 0x577   :  { %v876_v55 = vmul.f32 %v874_v4, %v871_v52  ;;  %v881_v56 = vpop.permute.xlu0 %880  ;;  %v879_v57 = vpop.permute.xlu1 %878 }
 0x578   :  { %v883_v26 = vsel %vm882_vm8, %v879_v57, %v881_v56  ;;  %v884_v27 = vsel %vm882_vm8, %v881_v56, %v879_v57  ;;  %vm1122_vm8 = vcmp.lt.s32.totalorder %v1678_v39, 81 }
 0x579   :  { %v1860_v58 = vadd.f32 %v876_v55, %v847_v45  ;;  %v889_v36 = vcombine.low %v883_v26, %v884_v27  ;;  %v946_v55 = vld [vmem:[#allocation8 + $0x100] sm:$0xff]  ;;  %v991_v26 = vld [vmem:[#allocation8 + $0x118] sm:$0xff] }
 0x57b   :  { %v896_v59 = vpop.permute.xlu0 %895  ;;  %v894_v60 = vpop.permute.xlu1 %893  ;;  %v891_v52 = vmul.f32 %v889_v36, %v886_v38  ;;  %v1006_v36 = vld [vmem:[#allocation8 + $0x120] sm:$0xff] }
 0x57c   :  { %v898_v28 = vsel %vm897_vm9, %v894_v60, %v896_v59  ;;  %v899_v29 = vsel %vm897_vm9, %v896_v59, %v894_v60  ;;  %vm1137_vm9 = vcmp.lt.s32.totalorder %v1678_v39, 80 }
 0x57d   :  { %v904_v37 = vcombine.low %v898_v28, %v899_v29 }
 0x57f   :  { %v911_v61 = vpop.permute.xlu0 %910  ;;  %v909_v62 = vpop.permute.xlu1 %908  ;;  %v906_v53 = vmul.f32 %v904_v37, %v901_v40  ;;  %v1021_v40 = vld [vmem:[#allocation8 + $0x128] sm:$0xff] }
 0x580   :  { %v913_v32 = vsel %vm912_vm10, %v909_v62, %v911_v61  ;;  %v914_v33 = vsel %vm912_vm10, %v911_v61, %v909_v62  ;;  %vm1152_vm10 = vcmp.lt.s32.totalorder %v1678_v39, 79 }
 0x581   :  { %v919_v43 = vcombine.low %v913_v32, %v914_v33 }
 0x583   :  { %v926_v63 = vpop.permute.xlu0 %925  ;;  %v924_v0 = vpop.permute.xlu1 %923  ;;  %v921_v59 = vmul.f32 %v919_v43, %v916_v47 }
 0x584   :  { %v928_v34 = vsel %vm927_vm11, %v924_v0, %v926_v63  ;;  %v929_v35 = vsel %vm927_vm11, %v926_v63, %v924_v0  ;;  %vm1167_vm11 = vcmp.lt.s32.totalorder %v1678_v39, 78 }
 0x585   :  { %v934_v44 = vcombine.low %v928_v34, %v929_v35 }
 0x587   :  { %v941_v5 = vpop.permute.xlu0 %940  ;;  %v939_v6 = vpop.permute.xlu1 %938  ;;  %v936_v0 = vmul.f32 %v934_v44, %v931_v54 }
 0x588   :  { %v943_v41 = vsel %vm942_vm12, %v939_v6, %v941_v5  ;;  %v944_v42 = vsel %vm942_vm12, %v941_v5, %v939_v6  ;;  %v961_v5 = vld [vmem:[#allocation8 + $0x108] sm:$0xff]  ;;  %v976_v6 = vld [vmem:[#allocation8 + $0x110] sm:$0xff]  ;;  %vm1182_vm12 = vcmp.lt.s32.totalorder %v1678_v39, 77 }
 0x589   :  { %v949_v4 = vcombine.low %v943_v41, %v944_v42  ;;  %v1036_v41 = vld [vmem:[#allocation8 + $0x130] sm:$0xff] }
 0x58b   :  { %v956_v7 = vpop.permute.xlu0 %955  ;;  %v954_v8 = vpop.permute.xlu1 %953 }
 0x58c   :  { %v958_v48 = vsel %vm957_vm13, %v954_v8, %v956_v7  ;;  %v959_v49 = vsel %vm957_vm13, %v956_v7, %v954_v8 }
 0x58d   :  { %v964_v60 = vcombine.low %v958_v48, %v959_v49 }
 0x58f   :  { %v971_v9 = vpop.permute.xlu0 %970  ;;  %v969_v10 = vpop.permute.xlu1 %968 }
 0x590   :  { %v973_v50 = vsel %vm972_vm14, %v969_v10, %v971_v9  ;;  %v974_v51 = vsel %vm972_vm14, %v971_v9, %v969_v10  ;;  %v892_v9 = vadd.f32 %v891_v52, %v1858_v1  ;;  %v907_v10 = vadd.f32 %v906_v53, %v1860_v58 }
 0x591   :  { %v979_v61 = vcombine.low %v973_v50, %v974_v51  ;;  %v1051_v50 = vld [vmem:[#allocation8 + $0x138] sm:$0xff] }
 0x592   :  { %v937_v35 = vadd.f32 %v936_v0, %v907_v10 }
 0x593   :  { %v986_v11 = vpop.permute.xlu0 %985  ;;  %v984_v12 = vpop.permute.xlu1 %983  ;;  %v981_v29 = vmul.f32 %v979_v61, %v976_v6  ;;  %v1081_v6 = vld [vmem:[#allocation8 + $0x148] sm:$0xff] }
 0x594   :  { %v988_v56 = vsel %vm987_vm15, %v984_v12, %v986_v11  ;;  %v989_v57 = vsel %vm987_vm15, %v986_v11, %v984_v12  ;;  %v951_v11 = vmul.f32 %v949_v4, %v946_v55 }
 0x595   :  { %v994_v12 = vcombine.low %v988_v56, %v989_v57  ;;  %v1066_v56 = vld [vmem:[#allocation8 + $0x140] sm:$0xff] }
 0x597   :  { %v1862_v15 = vpop.permute.xlu0 %1000  ;;  %v1864_v16 = vpop.permute.xlu1 %998 }
 0x598   :  { %v1003_v7 = vsel %vm1002_vm0, %v1864_v16, %v1862_v15  ;;  %v1004_v8 = vsel %vm1002_vm0, %v1862_v15, %v1864_v16  ;;  %v922_v15 = vadd.f32 %v921_v59, %v892_v9  ;;  %v966_v16 = vmul.f32 %v964_v60, %v961_v5 }
 0x599   :  { %v1009_v32 = vcombine.low %v1003_v7, %v1004_v8  ;;  %v1096_v7 = vld [vmem:[#allocation8 + $0x150] sm:$0xff] }
 0x59b   :  { %v1866_v17 = vpop.permute.xlu0 %1015  ;;  %v1868_v18 = vpop.permute.xlu1 %1013  ;;  %v1011_v44 = vmul.f32 %v1009_v32, %v1006_v36  ;;  %v1156_v36 = vld [vmem:[#allocation8 + $0x170] sm:$0xff] }
 0x59c   :  { %v1018_v27 = vsel %vm1017_vm1, %v1868_v18, %v1866_v17  ;;  %v1019_v28 = vsel %vm1017_vm1, %v1866_v17, %v1868_v18 }
 0x59d   :  { %v1024_v37 = vcombine.low %v1018_v27, %v1019_v28  ;;  %v1111_v28 = vld [vmem:[#allocation8 + $0x158] sm:$0xff] }
 0x59f   :  { %v1870_v19 = vpop.permute.xlu0 %1030  ;;  %v1872_v20 = vpop.permute.xlu1 %1028  ;;  %v1026_v54 = vmul.f32 %v1024_v37, %v1021_v40  ;;  %v1171_v40 = vld [vmem:[#allocation8 + $0x178] sm:$0xff] }
 0x5a0   :  { %v1033_v1 = vsel %vm1032_vm2, %v1872_v20, %v1870_v19  ;;  %v1034_v58 = vsel %vm1032_vm2, %v1870_v19, %v1872_v20  ;;  %v952_v19 = vadd.f32 %v951_v11, %v922_v15  ;;  %v996_v20 = vmul.f32 %v994_v12, %v991_v26 }
 0x5a1   :  { %v1039_v38 = vcombine.low %v1033_v1, %v1034_v58  ;;  %v1126_v1 = vld [vmem:[#allocation8 + $0x160] sm:$0xff] }
 0x5a3   :  { %v1874_v22 = vpop.permute.xlu0 %1045  ;;  %v1876_v23 = vpop.permute.xlu1 %1043  ;;  %v1041_v4 = vmul.f32 %v1039_v38, %v1036_v41 }
 0x5a4   :  { %v1048_v17 = vsel %vm1047_vm3, %v1876_v23, %v1874_v22  ;;  %v1049_v18 = vsel %vm1047_vm3, %v1874_v22, %v1876_v23  ;;  %v967_v22 = vadd.f32 %v966_v16, %v937_v35  ;;  %v982_v23 = vadd.f32 %v981_v29, %v952_v19  ;;  %v1141_v35 = vld [vmem:[#allocation8 + $0x168] sm:$0xff] }
 0x5a5   :  { %v1054_v47 = vcombine.low %v1048_v17, %v1049_v18 }
 0x5a6   :  { %v997_v53 = vadd.f32 %v996_v20, %v967_v22  ;;  %v1012_v60 = vadd.f32 %v1011_v44, %v982_v23 }
 0x5a7   :  { %v1880_v24 = vpop.permute.xlu0 %1060  ;;  %v1882_v25 = vpop.permute.xlu1 %1058  ;;  %v1056_v61 = vmul.f32 %v1054_v47, %v1051_v50  ;;  %v1186_v47 = vld [vmem:[#allocation8 + $0x180] sm:$0xff] }
 0x5a8   :  { %v1063_v42 = vsel %vm1062_vm4, %v1882_v25, %v1880_v24  ;;  %v1064_v43 = vsel %vm1062_vm4, %v1880_v24, %v1882_v25  ;;  %v1027_v26 = vadd.f32 %v1026_v54, %v997_v53  ;;  %v1042_v27 = vadd.f32 %v1041_v4, %v1012_v60 }
 0x5a9   :  { %v1069_v55 = vcombine.low %v1063_v42, %v1064_v43  ;;  %v1208_v60 = vsub.s32 0, %v1711_v21 }
 0x5ab   :  { %v1887_v30 = vpop.permute.xlu0 %1075  ;;  %v1889_v31 = vpop.permute.xlu1 %1073  ;;  %v1071_v10 = vmul.f32 %v1069_v55, %v1066_v56 }
 0x5ac   :  { %v1078_v51 = vsel %vm1077_vm5, %v1889_v31, %v1887_v30  ;;  %v1079_v24 = vsel %vm1077_vm5, %v1887_v30, %v1889_v31 }
 0x5ad   :  { %v1072_v19 = vadd.f32 %v1071_v10, %v1042_v27 }
 0x5af   :  { %v1897_v45 = vpop.permute.xlu0 %1090  ;;  %v1899_v46 = vpop.permute.xlu1 %1088 }
 0x5b0   :  { %v1093_v25 = vsel %vm1092_vm6, %v1899_v46, %v1897_v45  ;;  %v1094_v52 = vsel %vm1092_vm6, %v1897_v45, %v1899_v46  ;;  %v1084_v45 = vcombine.low %v1078_v51, %v1079_v24 }
 0x5b1   :  { %v1099_v46 = vcombine.low %v1093_v25, %v1094_v52 }
 0x5b2   :  { %v1086_v58 = vmul.f32 %v1084_v45, %v1081_v6  ;;  %v1230_v45 = vsub.s32 1, %v1711_v21 }
 0x5b3   :  { %v1106_v62 = vpop.permute.xlu0 %1105  ;;  %v1104_v63 = vpop.permute.xlu1 %1103  ;;  %v1101_v15 = vmul.f32 %v1099_v46, %v1096_v7  ;;  %v1234_v46 = vsub.s32 5, %v1711_v21 }
 0x5b4   :  { %v1108_v57 = vsel %vm1107_vm7, %v1104_v63, %v1106_v62  ;;  %v1109_v30 = vsel %vm1107_vm7, %v1106_v62, %v1104_v63 }
 0x5b5   :  { %v1114_v11 = vcombine.low %v1108_v57, %v1109_v30  ;;  %v1102_v42 = vadd.f32 %v1101_v15, %v1072_v19 }
 0x5b7   :  { %v1121_v33 = vpop.permute.xlu0 %1120  ;;  %v1119_v34 = vpop.permute.xlu1 %1118  ;;  %v1116_v20 = vmul.f32 %v1114_v11, %v1111_v28 }
 0x5b8   :  { %v1123_v31 = vsel %vm1122_vm8, %v1119_v34, %v1121_v33  ;;  %v1124_v59 = vsel %vm1122_vm8, %v1121_v33, %v1119_v34  ;;  %v1057_v34 = vadd.f32 %v1056_v61, %v1027_v26  ;;  %v1212_v61 = vsub.s32 4, %v1711_v21 }
 0x5b9   :  { %v1129_v12 = vcombine.low %v1123_v31, %v1124_v59 }
 0x5ba   :  { %v1087_v41 = vadd.f32 %v1086_v58, %v1057_v34 }
 0x5bb   :  { %v1136_v48 = vpop.permute.xlu0 %1135  ;;  %v1134_v49 = vpop.permute.xlu1 %1133  ;;  %v1131_v37 = vmul.f32 %v1129_v12, %v1126_v1 }
 0x5bc   :  { %v1138_v8 = vsel %vm1137_vm9, %v1134_v49, %v1136_v48  ;;  %v1139_v62 = vsel %vm1137_vm9, %v1136_v48, %v1134_v49  ;;  %v1117_v50 = vadd.f32 %v1116_v20, %v1087_v41 }
 0x5bd   :  { %v1144_v16 = vcombine.low %v1138_v8, %v1139_v62  ;;  %v1132_v51 = vadd.f32 %v1131_v37, %v1102_v42 }
 0x5bf   :  { %v1151_v0 = vpop.permute.xlu0 %1150  ;;  %v1149_v5 = vpop.permute.xlu1 %1148  ;;  %v1146_v43 = vmul.f32 %v1144_v16, %v1141_v35 }
 0x5c0   :  { %v1153_v63 = vsel %vm1152_vm10, %v1149_v5, %v1151_v0  ;;  %v1154_v9 = vsel %vm1152_vm10, %v1151_v0, %v1149_v5 }
 0x5c1   :  { %v1159_v29 = vcombine.low %v1153_v63, %v1154_v9  ;;  %v1147_v52 = vadd.f32 %v1146_v43, %v1117_v50 }
 0x5c3   :  { %v1166_v32 = vpop.permute.xlu0 %1165  ;;  %v1164_v33 = vpop.permute.xlu1 %1163  ;;  %v1161_v22 = vmul.f32 %v1159_v29, %v1156_v36 }
 0x5c4   :  { %v1168_v17 = vsel %vm1167_vm11, %v1164_v33, %v1166_v32  ;;  %v1169_v18 = vsel %vm1167_vm11, %v1166_v32, %v1164_v33 }
 0x5c5   :  { %v1174_v38 = vcombine.low %v1168_v17, %v1169_v18  ;;  %v1162_v39 = vadd.f32 %v1161_v22, %v1132_v51 }
 0x5c7   :  { %v1181_v23 = vpop.permute.xlu0 %1180  ;;  %v1179_v44 = vpop.permute.xlu1 %1178  ;;  %v1176_v24 = vmul.f32 %v1174_v38, %v1171_v40 }
 0x5c8   :  { %v1183_v48 = vsel %vm1182_vm12, %v1179_v44, %v1181_v23  ;;  %v1184_v49 = vsel %vm1182_vm12, %v1181_v23, %v1179_v44 }
 0x5c9   :  { %v1189_v25 = vcombine.low %v1183_v48, %v1184_v49  ;;  %v1177_v54 = vadd.f32 %v1176_v24, %v1147_v52 }
 0x5cb   :  { %v1191_v53 = vmul.f32 %v1189_v25, %v1186_v47 }
 0x5cd   :  { %v1192_v4 = vadd.f32 %v1191_v53, %v1162_v39 }
 0x5cf   :  { %v1193_v55 = vadd.f32 %v1192_v4, %v1177_v54 }
 0x5d1   :  { %v1277_v56 = vrot.slane %v1193_v55, 10 }
 0x5d3   :  { %v1198_v57 = vadd.f32 %v1277_v56, %v1193_v55 }
 0x5d5   :  { %v1278_v30 = vmul.f32 -1.442695, %v1198_v57 }
 0x5d7   :  { %1376 = vpow2.f32 %v1278_v30 }
 0x5e1   :  { %v1377_v31 = vpop.eup %1376 }
 0x5e2   :  { %v1202_v59 = vadd.f32 1.0, %v1377_v31 }
 0x5e4   :  { %1378 = vrcp.f32 %v1202_v59 }
 0x5ee   :  { %v1379_v0 = vpop.eup %1378 }
 0x5ef   :  { %v1209_v5 = vrot.slane %v1379_v0, %v1208_v60  ;;  %v1213_v6 = vrot.slane %v1379_v0, %v1212_v61  ;;  %v1231_v7 = vrot.slane %v1379_v0, %v1230_v45  ;;  %v1235_v8 = vrot.slane %v1379_v0, %v1234_v46 }
 0x5f1   :  { %v1219_v62 = vrot.slane %v1209_v5, %v1208_v60  ;;  %v1223_v63 = vrot.slane %v1213_v6, %v1208_v60  ;;  %v1241_v9 = vrot.slane %v1231_v7, %v1230_v45  ;;  %v1245_v10 = vrot.slane %v1235_v8, %v1230_v45 }
 0x5f3   :  { %v1224_v11 = vmul.f32 %v1219_v62, %v1694_v2  ;;  %v1225_v12 = vmul.f32 %v1223_v63, %v1696_v3  ;;  %v1246_v26 = vmul.f32 %v1241_v9, %v1704_v13  ;;  %v1247_v27 = vmul.f32 %v1245_v10, %v1706_v14 }
 0x5f5   :  { %1226 = vst [vmem:[#allocation10] sm:$0xff] %v1224_v11  ;;  %1227 = vst [vmem:[#allocation10 + $0x8] sm:$0xff] %v1225_v12 }
 0x5f6   :  { %1249 = vst [vmem:[#allocation10 + $0x10] sm:$0xff] %v1246_v26  ;;  %1250 = vst [vmem:[#allocation10 + $0x18] sm:$0xff] %v1247_v27 }
 0x5f7   :  { %1479 = shalt.err (!%p1476_p8)
}
 0x5f8   :  { %s1480_s3 = scalar_lea.hbm %s2027_s7, 512 }
 0x5f9   :  { %p1481_p9 = scmp.ne.s32.totalorder %s2027_s7, %s1480_s3  ;;  %p1484_p10 = scmp.lt.u32.totalorder %s1480_s3, %s2027_s7 }
 0x5fb   :  { %p1486_p11 = pnand %p1484_p10, %p1481_p9 }
 0x5fd   :  { %1489 = shalt.err (!%p1486_p11)
}
 0x5fe   :  { %1262 = dma.vmem_to_hbm [thread:$0]  %s1257_s2, 512, %s2027_s7, [#allocation4], %s1502_s1, %s1502_s1, %s1503_s25  }
 0x5ff   :  { %1496 = dma.done.wait [#allocation4], 512  }
 0x600   :  { %1497 = vsyncadd [#allocation4], 4294966784 }
 0x601   :  { %1266 = vsyncpa [#allocation3], 1 }
 0x602   :  { %1267 = vsyncpa [#allocation6], 1 }
 0x603   :  { %1268 = vsyncpa [#allocation9], 1 }
 0x604   :  { %1269 = vsyncpa [#allocation4], 1 }

</bundles_post_ra>
